<compile_context>
chip_gen: v5e
topology: v5e:2x2
jax: 0.10.0
libtpu: 0.0.40
codegen_flags: <defaults>
</compile_context>

<pallas_src>
import numpy as np
import jax
import jax.numpy as jnp
from jax.experimental import pallas as pl
from jax.experimental.pallas import tpu as pltpu


def _round_up(x, k):
    return ((x + k - 1) // k) * k


def _build_group_table(axes_dim, theta, g):
    """Constant table for one group of g packed positions.

    Row p*n_axes + i  : omega of axis i, replicated over the 4 (2x2) slots of
                        each of that axis' frequencies, placed in slot p's
                        column range; zero elsewhere.
    Last row          : phase [pi/2, pi, 0, pi/2] per frequency, so that
                        sin(ang + phase) == [cos, -sin, sin, cos].
    Shape: (g*n_axes + 1, g*4*dh) float32.
    """
    n_axes = len(axes_dim)
    dh = sum(d // 2 for d in axes_dim)
    w4 = 4 * dh
    tab = np.zeros((g * n_axes + 1, g * w4), dtype=np.float64)
    phase = np.array([np.pi / 2.0, np.pi, 0.0, np.pi / 2.0], dtype=np.float64)
    for p in range(g):
        off = 0
        for i, d in enumerate(axes_dim):
            half = d // 2
            # torch computes the scale/omega in float64; cast to f32 at the end.
            omega = 1.0 / (float(theta) ** (np.arange(0, d, 2, dtype=np.float64) / d))
            base_cols = p * w4 + 4 * (off + np.arange(half))
            cols = (base_cols[:, None] + np.arange(4)[None, :]).ravel()
            tab[p * n_axes + i, cols] = np.repeat(omega, 4)
            off += half
        tab[g * n_axes, p * w4:(p + 1) * w4] = np.tile(phase, dh)
    return jnp.asarray(tab.astype(np.float32))


def _make_kernel(m, k0, wg):
    """Kernel over one (1, tnp, m*k0) ids tile -> (1, tnp, m*wg) output tile."""

    def kernel(ids_ref, tab_ref, out_ref):
        pos = ids_ref[0]            # (tnp, m*k0) f32 position ids (packed rows)
        tab = tab_ref[...]          # (k0+1, wg)  f32 omega rows + phase row
        for grp in range(m):        # static unroll over groups in the packed row
            base = grp * k0
            # ang[t, c] = sum_i pos[t, axis_i] * omega[c] + phase[c]
            # Unrolled VPU broadcast-multiply (no MXU, no bf16 rounding of ids);
            # other axes' omega entries are exactly 0.
            ang = pos[:, base:base + 1] * tab[0:1, :] + tab[k0:k0 + 1, :]
            for t in range(1, k0):
                ang = ang + pos[:, base + t:base + t + 1] * tab[t:t + 1, :]
            # One lane-dense sin() yields the interleaved [cos, -sin, sin, cos].
            out_ref[0, :, grp * wg:(grp + 1) * wg] = jnp.sin(ang)

    return kernel


def _pick_tile_rows(np_rows, batch, row_bytes):
    """Packed rows per grid step along the (packed) sequence axis."""
    if np_rows <= 8:
        return np_rows
    # VMEM budget for the double-buffered ids/out blocks; the table and Mosaic's
    # internal scratch stay well below the default scoped VMEM limit on every
    # generation (v5e 16 MiB, v6e/v7x 32 MiB scoped default).
    budget = 8 << 20
    tmax = max(8, (budget // max(row_bytes, 1)) // 8 * 8)
    steps = -(-np_rows // min(tmax, np_rows))        # min #seq steps under budget
    if batch % 2 == 1 and steps % 2 == 1:
        # v7x megacore: keep the total number of "parallel" grid steps even so
        # the work splits evenly across both TensorCores; for batch == 1 this
        # also guarantees >= 2 steps so the DMA pipeline can overlap.
        steps += 1
    tnp = _round_up(-(-np_rows // steps), 8)
    tnp = min(tnp, tmax)
    if tnp >= np_rows:                               # never exceed the array extent
        tnp = max(8, (np_rows // 8) * 8)
    return max(tnp, 8)


def embed_nd_forward(ids, axes_dim, theta):
    """ids: (B, N, n_axes) -> (B, 1, N, sum(axes_dim)//2, 2, 2) float32."""
    ids = jnp.asarray(ids, jnp.float32)
    B, N, n_axes = ids.shape
    assert n_axes == len(axes_dim)
    dh = sum(d // 2 for d in axes_dim)
    w4 = 4 * dh

    # g: positions per group so one group's output row (g*4*dh lanes) is a
    #    multiple of 128 -> lane-dense trig and unmasked stores.
    g = 1
    while (g * w4) % 128 != 0 and g < 128:
        g += 1
    if (g * w4) % 128 != 0 or N % g != 0:
        g = 1                                   # correct fallback (masked stores)
    # m: groups per packed row; widens the tiny ids rows (fewer / larger DMA
    #    rows, less lane padding) without changing the per-position math.
    m = 1
    while (2 * m * g * w4) <= 2048 and N % (2 * m * g) == 0:
        m *= 2

    r = g * m                                   # positions per packed row
    np_rows = N // r
    k0 = g * n_axes                             # ids columns per group
    wg = g * w4                                 # output lanes per group

    ids_p = ids.reshape(B, np_rows, r * n_axes)     # free row-major view
    tab = _build_group_table(axes_dim, theta, g)    # (k0+1, wg), a few KiB

    row_bytes = 2 * 4 * (_round_up(r * n_axes, 128) + _round_up(r * w4, 128))
    tnp = _pick_tile_rows(np_rows, B, row_bytes)

    packed = pl.pallas_call(
        _make_kernel(m, k0, wg),
        out_shape=jax.ShapeDtypeStruct((B, np_rows, r * w4), jnp.float32),
        grid_spec=pltpu.PrefetchScalarGridSpec(
            num_scalar_prefetch=0,
            grid=(B, pl.cdiv(np_rows, tnp)),
            in_specs=[
                pl.BlockSpec((1, tnp, r * n_axes), lambda b, s: (b, s, 0)),
                # Constant table; grid-invariant index_map -> DMA'd once.
                pl.BlockSpec((k0 + 1, wg), lambda b, s: (0, 0)),
            ],
            out_specs=pl.BlockSpec((1, tnp, r * w4), lambda b, s: (b, s, 0)),
        ),
        compiler_params=pltpu.CompilerParams(
            dimension_semantics=("parallel", "parallel")),
    )(ids_p, tab)

    # Free layout plumbing: row-major split into 2x2 rotation matrices + head axis.
    emb = packed.reshape(B, N, dh, 2, 2)
    return emb[:, None]                          # (B, 1, N, dh, 2, 2)


def _reference(ids, axes_dim, theta):
    ids = ids.astype(jnp.float32)
    outs = []
    for i, d in enumerate(axes_dim):
        scale = np.arange(0, d, 2, dtype=np.float64) / d
        omega = jnp.asarray((1.0 / (float(theta) ** scale)).astype(np.float32))
        ang = jnp.einsum("bn,k->bnk", ids[..., i], omega)
        o = jnp.stack([jnp.cos(ang), -jnp.sin(ang),
                       jnp.sin(ang), jnp.cos(ang)], axis=-1)
        outs.append(o.reshape(*ang.shape, 2, 2))
    emb = jnp.concatenate(outs, axis=-3)
    return emb[:, None]


if __name__ == "__main__":
    theta = 10000
    key = jax.random.PRNGKey(0)

    # Config 1: small EmbedND (dim=32, axes_dim=[8,12,12]) -> exercises the
    # small-dh packing path (g=2) and the lane-dense output guard.
    axes_dim1 = [8, 12, 12]
    B1, N1 = 2, 8
    k1, k2 = jax.random.split(key)
    ids1 = jax.random.randint(k1, (B1, N1, len(axes_dim1)), 0, 64).astype(jnp.float32)
    out1 = jax.block_until_ready(embed_nd_forward(ids1, axes_dim1, theta))
    ref1 = _reference(ids1, axes_dim1, theta)
    assert out1.shape == (B1, 1, N1, sum(axes_dim1) // 2, 2, 2), out1.shape
    assert out1.dtype == jnp.float32
    np.testing.assert_allclose(np.asarray(out1), np.asarray(ref1),
                               rtol=1e-5, atol=1e-5)

    # Config 2: flux-like axes (dim=128, axes_dim=[16,56,56]) at a tiny sequence
    # length -> exercises the g=1 / m-widened packed-row path.
    axes_dim2 = [16, 56, 56]
    B2, N2 = 1, 16
    ids2 = jax.random.randint(k2, (B2, N2, len(axes_dim2)), 0, 64).astype(jnp.float32)
    out2 = jax.block_until_ready(embed_nd_forward(ids2, axes_dim2, theta))
    ref2 = _reference(ids2, axes_dim2, theta)
    assert out2.shape == (B2, 1, N2, sum(axes_dim2) // 2, 2, 2), out2.shape
    np.testing.assert_allclose(np.asarray(out2), np.asarray(ref2),
                               rtol=1e-5, atol=1e-5)

    print("KERNEL_OK")
</pallas_src>

<mosaic_0001>
module attributes {stable_mosaic.version = 11 : i64} {
  func.func @kernel(%arg0: i32, %arg1: i32, %arg2: memref<1x1x24xf32, #tpu.memory_space<vmem>>, %arg3: memref<7x128xf32, #tpu.memory_space<vmem>>, %arg4: memref<1x1x512xf32, #tpu.memory_space<vmem>>) attributes {dimension_semantics = [#tpu.dimension_semantics<parallel>, #tpu.dimension_semantics<parallel>], iteration_bounds = array<i64: 2, 1>, scalar_prefetch = 0 : i64, scratch_operands = 0 : i64, tpu.core_type = #tpu.core_type<tc>, window_params = [{transform_indices = @transform_0, window_bounds = array<i64: 1, 1, 24>}, {pipeline_mode = #tpu.pipeline_mode<synchronous>, transform_indices = @transform_1, window_bounds = array<i64: 7, 128>}, {transform_indices = @transform_2, window_bounds = array<i64: 1, 1, 512>}]} {
    %c0 = arith.constant 0 : index
    %c0_0 = arith.constant 0 : index
    %c0_1 = arith.constant 0 : index
    %0 = vector.load %arg2[%c0, %c0_0, %c0_1] : memref<1x1x24xf32, #tpu.memory_space<vmem>>, vector<1x1x24xf32>
    %1 = vector.shape_cast %0 : vector<1x1x24xf32> to vector<1x24xf32>
    %c0_2 = arith.constant 0 : index
    %c0_3 = arith.constant 0 : index
    %2 = vector.load %arg3[%c0_2, %c0_3] : memref<7x128xf32, #tpu.memory_space<vmem>>, vector<7x128xf32>
    %3 = vector.extract_strided_slice %1 {offsets = [0, 0], sizes = [1, 1], strides = [1, 1]} : vector<1x24xf32> to vector<1x1xf32>
    %4 = vector.extract_strided_slice %2 {offsets = [0, 0], sizes = [1, 128], strides = [1, 1]} : vector<7x128xf32> to vector<1x128xf32>
    %5 = vector.broadcast %3 : vector<1x1xf32> to vector<1x128xf32>
    %6 = arith.mulf %5, %4 : vector<1x128xf32>
    %7 = vector.extract_strided_slice %2 {offsets = [6, 0], sizes = [1, 128], strides = [1, 1]} : vector<7x128xf32> to vector<1x128xf32>
    %8 = arith.addf %6, %7 : vector<1x128xf32>
    %9 = vector.extract_strided_slice %1 {offsets = [0, 1], sizes = [1, 1], strides = [1, 1]} : vector<1x24xf32> to vector<1x1xf32>
    %10 = vector.extract_strided_slice %2 {offsets = [1, 0], sizes = [1, 128], strides = [1, 1]} : vector<7x128xf32> to vector<1x128xf32>
    %11 = vector.broadcast %9 : vector<1x1xf32> to vector<1x128xf32>
    %12 = arith.mulf %11, %10 : vector<1x128xf32>
    %13 = arith.addf %8, %12 : vector<1x128xf32>
    %14 = vector.extract_strided_slice %1 {offsets = [0, 2], sizes = [1, 1], strides = [1, 1]} : vector<1x24xf32> to vector<1x1xf32>
    %15 = vector.extract_strided_slice %2 {offsets = [2, 0], sizes = [1, 128], strides = [1, 1]} : vector<7x128xf32> to vector<1x128xf32>
    %16 = vector.broadcast %14 : vector<1x1xf32> to vector<1x128xf32>
    %17 = arith.mulf %16, %15 : vector<1x128xf32>
    %18 = arith.addf %13, %17 : vector<1x128xf32>
    %19 = vector.extract_strided_slice %1 {offsets = [0, 3], sizes = [1, 1], strides = [1, 1]} : vector<1x24xf32> to vector<1x1xf32>
    %20 = vector.extract_strided_slice %2 {offsets = [3, 0], sizes = [1, 128], strides = [1, 1]} : vector<7x128xf32> to vector<1x128xf32>
    %21 = vector.broadcast %19 : vector<1x1xf32> to vector<1x128xf32>
    %22 = arith.mulf %21, %20 : vector<1x128xf32>
    %23 = arith.addf %18, %22 : vector<1x128xf32>
    %24 = vector.extract_strided_slice %1 {offsets = [0, 4], sizes = [1, 1], strides = [1, 1]} : vector<1x24xf32> to vector<1x1xf32>
    %25 = vector.extract_strided_slice %2 {offsets = [4, 0], sizes = [1, 128], strides = [1, 1]} : vector<7x128xf32> to vector<1x128xf32>
    %26 = vector.broadcast %24 : vector<1x1xf32> to vector<1x128xf32>
    %27 = arith.mulf %26, %25 : vector<1x128xf32>
    %28 = arith.addf %23, %27 : vector<1x128xf32>
    %29 = vector.extract_strided_slice %1 {offsets = [0, 5], sizes = [1, 1], strides = [1, 1]} : vector<1x24xf32> to vector<1x1xf32>
    %30 = vector.extract_strided_slice %2 {offsets = [5, 0], sizes = [1, 128], strides = [1, 1]} : vector<7x128xf32> to vector<1x128xf32>
    %31 = vector.broadcast %29 : vector<1x1xf32> to vector<1x128xf32>
    %32 = arith.mulf %31, %30 : vector<1x128xf32>
    %33 = arith.addf %28, %32 : vector<1x128xf32>
    %34 = math.sin %33 : vector<1x128xf32>
    %c0_4 = arith.constant 0 : index
    %c0_5 = arith.constant 0 : index
    %c0_6 = arith.constant 0 : index
    %35 = vector.load %arg4[%c0_4, %c0_5, %c0_6] : memref<1x1x512xf32, #tpu.memory_space<vmem>>, vector<1x1x128xf32>
    %36 = vector.shape_cast %35 : vector<1x1x128xf32> to vector<1x128xf32>
    %37 = vector.shape_cast %34 : vector<1x128xf32> to vector<1x1x128xf32>
    tpu.vector_store %arg4[%c0_4, %c0_5, %c0_6], %37 {strides = array<i32>} : memref<1x1x512xf32, #tpu.memory_space<vmem>>, vector<1x1x128xf32>,
    %38 = vector.extract_strided_slice %1 {offsets = [0, 6], sizes = [1, 1], strides = [1, 1]} : vector<1x24xf32> to vector<1x1xf32>
    %39 = vector.extract_strided_slice %2 {offsets = [0, 0], sizes = [1, 128], strides = [1, 1]} : vector<7x128xf32> to vector<1x128xf32>
    %40 = vector.broadcast %38 : vector<1x1xf32> to vector<1x128xf32>
    %41 = arith.mulf %40, %39 : vector<1x128xf32>
    %42 = vector.extract_strided_slice %2 {offsets = [6, 0], sizes = [1, 128], strides = [1, 1]} : vector<7x128xf32> to vector<1x128xf32>
    %43 = arith.addf %41, %42 : vector<1x128xf32>
    %44 = vector.extract_strided_slice %1 {offsets = [0, 7], sizes = [1, 1], strides = [1, 1]} : vector<1x24xf32> to vector<1x1xf32>
    %45 = vector.extract_strided_slice %2 {offsets = [1, 0], sizes = [1, 128], strides = [1, 1]} : vector<7x128xf32> to vector<1x128xf32>
    %46 = vector.broadcast %44 : vector<1x1xf32> to vector<1x128xf32>
    %47 = arith.mulf %46, %45 : vector<1x128xf32>
    %48 = arith.addf %43, %47 : vector<1x128xf32>
    %49 = vector.extract_strided_slice %1 {offsets = [0, 8], sizes = [1, 1], strides = [1, 1]} : vector<1x24xf32> to vector<1x1xf32>
    %50 = vector.extract_strided_slice %2 {offsets = [2, 0], sizes = [1, 128], strides = [1, 1]} : vector<7x128xf32> to vector<1x128xf32>
    %51 = vector.broadcast %49 : vector<1x1xf32> to vector<1x128xf32>
    %52 = arith.mulf %51, %50 : vector<1x128xf32>
    %53 = arith.addf %48, %52 : vector<1x128xf32>
    %54 = vector.extract_strided_slice %1 {offsets = [0, 9], sizes = [1, 1], strides = [1, 1]} : vector<1x24xf32> to vector<1x1xf32>
    %55 = vector.extract_strided_slice %2 {offsets = [3, 0], sizes = [1, 128], strides = [1, 1]} : vector<7x128xf32> to vector<1x128xf32>
    %56 = vector.broadcast %54 : vector<1x1xf32> to vector<1x128xf32>
    %57 = arith.mulf %56, %55 : vector<1x128xf32>
    %58 = arith.addf %53, %57 : vector<1x128xf32>
    %59 = vector.extract_strided_slice %1 {offsets = [0, 10], sizes = [1, 1], strides = [1, 1]} : vector<1x24xf32> to vector<1x1xf32>
    %60 = vector.extract_strided_slice %2 {offsets = [4, 0], sizes = [1, 128], strides = [1, 1]} : vector<7x128xf32> to vector<1x128xf32>
    %61 = vector.broadcast %59 : vector<1x1xf32> to vector<1x128xf32>
    %62 = arith.mulf %61, %60 : vector<1x128xf32>
    %63 = arith.addf %58, %62 : vector<1x128xf32>
    %64 = vector.extract_strided_slice %1 {offsets = [0, 11], sizes = [1, 1], strides = [1, 1]} : vector<1x24xf32> to vector<1x1xf32>
    %65 = vector.extract_strided_slice %2 {offsets = [5, 0], sizes = [1, 128], strides = [1, 1]} : vector<7x128xf32> to vector<1x128xf32>
    %66 = vector.broadcast %64 : vector<1x1xf32> to vector<1x128xf32>
    %67 = arith.mulf %66, %65 : vector<1x128xf32>
    %68 = arith.addf %63, %67 : vector<1x128xf32>
    %69 = math.sin %68 : vector<1x128xf32>
    %c0_7 = arith.constant 0 : index
    %c0_8 = arith.constant 0 : index
    %c128 = arith.constant 128 : index
    %70 = vector.load %arg4[%c0_7, %c0_8, %c128] : memref<1x1x512xf32, #tpu.memory_space<vmem>>, vector<1x1x128xf32>
    %71 = vector.shape_cast %70 : vector<1x1x128xf32> to vector<1x128xf32>
    %72 = vector.shape_cast %69 : vector<1x128xf32> to vector<1x1x128xf32>
    tpu.vector_store %arg4[%c0_7, %c0_8, %c128], %72 {strides = array<i32>} : memref<1x1x512xf32, #tpu.memory_space<vmem>>, vector<1x1x128xf32>,
    %73 = vector.extract_strided_slice %1 {offsets = [0, 12], sizes = [1, 1], strides = [1, 1]} : vector<1x24xf32> to vector<1x1xf32>
    %74 = vector.extract_strided_slice %2 {offsets = [0, 0], sizes = [1, 128], strides = [1, 1]} : vector<7x128xf32> to vector<1x128xf32>
    %75 = vector.broadcast %73 : vector<1x1xf32> to vector<1x128xf32>
    %76 = arith.mulf %75, %74 : vector<1x128xf32>
    %77 = vector.extract_strided_slice %2 {offsets = [6, 0], sizes = [1, 128], strides = [1, 1]} : vector<7x128xf32> to vector<1x128xf32>
    %78 = arith.addf %76, %77 : vector<1x128xf32>
    %79 = vector.extract_strided_slice %1 {offsets = [0, 13], sizes = [1, 1], strides = [1, 1]} : vector<1x24xf32> to vector<1x1xf32>
    %80 = vector.extract_strided_slice %2 {offsets = [1, 0], sizes = [1, 128], strides = [1, 1]} : vector<7x128xf32> to vector<1x128xf32>
    %81 = vector.broadcast %79 : vector<1x1xf32> to vector<1x128xf32>
    %82 = arith.mulf %81, %80 : vector<1x128xf32>
    %83 = arith.addf %78, %82 : vector<1x128xf32>
    %84 = vector.extract_strided_slice %1 {offsets = [0, 14], sizes = [1, 1], strides = [1, 1]} : vector<1x24xf32> to vector<1x1xf32>
    %85 = vector.extract_strided_slice %2 {offsets = [2, 0], sizes = [1, 128], strides = [1, 1]} : vector<7x128xf32> to vector<1x128xf32>
    %86 = vector.broadcast %84 : vector<1x1xf32> to vector<1x128xf32>
    %87 = arith.mulf %86, %85 : vector<1x128xf32>
    %88 = arith.addf %83, %87 : vector<1x128xf32>
    %89 = vector.extract_strided_slice %1 {offsets = [0, 15], sizes = [1, 1], strides = [1, 1]} : vector<1x24xf32> to vector<1x1xf32>
    %90 = vector.extract_strided_slice %2 {offsets = [3, 0], sizes = [1, 128], strides = [1, 1]} : vector<7x128xf32> to vector<1x128xf32>
    %91 = vector.broadcast %89 : vector<1x1xf32> to vector<1x128xf32>
    %92 = arith.mulf %91, %90 : vector<1x128xf32>
    %93 = arith.addf %88, %92 : vector<1x128xf32>
    %94 = vector.extract_strided_slice %1 {offsets = [0, 16], sizes = [1, 1], strides = [1, 1]} : vector<1x24xf32> to vector<1x1xf32>
    %95 = vector.extract_strided_slice %2 {offsets = [4, 0], sizes = [1, 128], strides = [1, 1]} : vector<7x128xf32> to vector<1x128xf32>
    %96 = vector.broadcast %94 : vector<1x1xf32> to vector<1x128xf32>
    %97 = arith.mulf %96, %95 : vector<1x128xf32>
    %98 = arith.addf %93, %97 : vector<1x128xf32>
    %99 = vector.extract_strided_slice %1 {offsets = [0, 17], sizes = [1, 1], strides = [1, 1]} : vector<1x24xf32> to vector<1x1xf32>
    %100 = vector.extract_strided_slice %2 {offsets = [5, 0], sizes = [1, 128], strides = [1, 1]} : vector<7x128xf32> to vector<1x128xf32>
    %101 = vector.broadcast %99 : vector<1x1xf32> to vector<1x128xf32>
    %102 = arith.mulf %101, %100 : vector<1x128xf32>
    %103 = arith.addf %98, %102 : vector<1x128xf32>
    %104 = math.sin %103 : vector<1x128xf32>
    %c0_9 = arith.constant 0 : index
    %c0_10 = arith.constant 0 : index
    %c256 = arith.constant 256 : index
    %105 = vector.load %arg4[%c0_9, %c0_10, %c256] : memref<1x1x512xf32, #tpu.memory_space<vmem>>, vector<1x1x128xf32>
    %106 = vector.shape_cast %105 : vector<1x1x128xf32> to vector<1x128xf32>
    %107 = vector.shape_cast %104 : vector<1x128xf32> to vector<1x1x128xf32>
    tpu.vector_store %arg4[%c0_9, %c0_10, %c256], %107 {strides = array<i32>} : memref<1x1x512xf32, #tpu.memory_space<vmem>>, vector<1x1x128xf32>,
    %108 = vector.extract_strided_slice %1 {offsets = [0, 18], sizes = [1, 1], strides = [1, 1]} : vector<1x24xf32> to vector<1x1xf32>
    %109 = vector.extract_strided_slice %2 {offsets = [0, 0], sizes = [1, 128], strides = [1, 1]} : vector<7x128xf32> to vector<1x128xf32>
    %110 = vector.broadcast %108 : vector<1x1xf32> to vector<1x128xf32>
    %111 = arith.mulf %110, %109 : vector<1x128xf32>
    %112 = vector.extract_strided_slice %2 {offsets = [6, 0], sizes = [1, 128], strides = [1, 1]} : vector<7x128xf32> to vector<1x128xf32>
    %113 = arith.addf %111, %112 : vector<1x128xf32>
    %114 = vector.extract_strided_slice %1 {offsets = [0, 19], sizes = [1, 1], strides = [1, 1]} : vector<1x24xf32> to vector<1x1xf32>
    %115 = vector.extract_strided_slice %2 {offsets = [1, 0], sizes = [1, 128], strides = [1, 1]} : vector<7x128xf32> to vector<1x128xf32>
    %116 = vector.broadcast %114 : vector<1x1xf32> to vector<1x128xf32>
    %117 = arith.mulf %116, %115 : vector<1x128xf32>
    %118 = arith.addf %113, %117 : vector<1x128xf32>
    %119 = vector.extract_strided_slice %1 {offsets = [0, 20], sizes = [1, 1], strides = [1, 1]} : vector<1x24xf32> to vector<1x1xf32>
    %120 = vector.extract_strided_slice %2 {offsets = [2, 0], sizes = [1, 128], strides = [1, 1]} : vector<7x128xf32> to vector<1x128xf32>
    %121 = vector.broadcast %119 : vector<1x1xf32> to vector<1x128xf32>
    %122 = arith.mulf %121, %120 : vector<1x128xf32>
    %123 = arith.addf %118, %122 : vector<1x128xf32>
    %124 = vector.extract_strided_slice %1 {offsets = [0, 21], sizes = [1, 1], strides = [1, 1]} : vector<1x24xf32> to vector<1x1xf32>
    %125 = vector.extract_strided_slice %2 {offsets = [3, 0], sizes = [1, 128], strides = [1, 1]} : vector<7x128xf32> to vector<1x128xf32>
    %126 = vector.broadcast %124 : vector<1x1xf32> to vector<1x128xf32>
    %127 = arith.mulf %126, %125 : vector<1x128xf32>
    %128 = arith.addf %123, %127 : vector<1x128xf32>
    %129 = vector.extract_strided_slice %1 {offsets = [0, 22], sizes = [1, 1], strides = [1, 1]} : vector<1x24xf32> to vector<1x1xf32>
    %130 = vector.extract_strided_slice %2 {offsets = [4, 0], sizes = [1, 128], strides = [1, 1]} : vector<7x128xf32> to vector<1x128xf32>
    %131 = vector.broadcast %129 : vector<1x1xf32> to vector<1x128xf32>
    %132 = arith.mulf %131, %130 : vector<1x128xf32>
    %133 = arith.addf %128, %132 : vector<1x128xf32>
    %134 = vector.extract_strided_slice %1 {offsets = [0, 23], sizes = [1, 1], strides = [1, 1]} : vector<1x24xf32> to vector<1x1xf32>
    %135 = vector.extract_strided_slice %2 {offsets = [5, 0], sizes = [1, 128], strides = [1, 1]} : vector<7x128xf32> to vector<1x128xf32>
    %136 = vector.broadcast %134 : vector<1x1xf32> to vector<1x128xf32>
    %137 = arith.mulf %136, %135 : vector<1x128xf32>
    %138 = arith.addf %133, %137 : vector<1x128xf32>
    %139 = math.sin %138 : vector<1x128xf32>
    %c0_11 = arith.constant 0 : index
    %c0_12 = arith.constant 0 : index
    %c384 = arith.constant 384 : index
    %140 = vector.load %arg4[%c0_11, %c0_12, %c384] : memref<1x1x512xf32, #tpu.memory_space<vmem>>, vector<1x1x128xf32>
    %141 = vector.shape_cast %140 : vector<1x1x128xf32> to vector<1x128xf32>
    %142 = vector.shape_cast %139 : vector<1x128xf32> to vector<1x1x128xf32>
    tpu.vector_store %arg4[%c0_11, %c0_12, %c384], %142 {strides = array<i32>} : memref<1x1x512xf32, #tpu.memory_space<vmem>>, vector<1x1x128xf32>,
    return
  }
  func.func @transform_0(%arg0: i32, %arg1: i32) -> (i32, i32, i32) {
    %c0_i32 = arith.constant 0 : i32
    %c0_i32_0 = arith.constant 0 : i32
    return %arg0, %arg1, %c0_i32 : i32, i32, i32
  }
  func.func @transform_1(%arg0: i32, %arg1: i32) -> (i32, i32) {
    %c0_i32 = arith.constant 0 : i32
    %c0_i32_0 = arith.constant 0 : i32
    %c0_i32_1 = arith.constant 0 : i32
    return %c0_i32, %c0_i32_0 : i32, i32
  }
  func.func @transform_2(%arg0: i32, %arg1: i32) -> (i32, i32, i32) {
    %c0_i32 = arith.constant 0 : i32
    %c0_i32_0 = arith.constant 0 : i32
    return %arg0, %arg1, %c0_i32 : i32, i32, i32
  }
}

</mosaic_0001>

<bundles_post_ra>
// kernel: tpu_custom_call.1
= control target key start
LH: loop header
LB: loop body
LE: loop exit
PB: predicated region body
PF: predicated region fallthrough
CT: control target
= control target key end

     0   :  { %7 = vsyncpa [#allocation3], 0  ;;  %s2185_s0 = inlined_call_operand.hbm [shape: f32[2,1,24], index: 0, kind: input, shape index: {}]   ;;  %s2186_s1 = inlined_call_operand.hbm [shape: f32[7,128], index: 1, kind: input, shape index: {}]   ;;  %s2187_s2 = inlined_call_operand.hbm [shape: f32[2,1,512], index: 2, kind: output, shape index: {}]  }
   0x1   :  { %9 = vsyncpa [#allocation3 + $0x1], 0 }
   0x2   :  { %10 = vsyncpa [#allocation6], 0 }
   0x3   :  { %11 = vsyncpa [#allocation4], 0 }
   0x4   :  { %13 = vsyncpa [#allocation4 + $0x1], 0  ;;  %s1501_s9 = smov 0   ;;  %s1503_s10 = smov 0  }
   0x5   :  { %s1505_s11 = smov 0   ;;  %s1507_s12 = smov 0  }
   0x6   :  { %s1509_s13 = smov 0   ;;  %s1511_s14 = smov 0  }
   0x7 LB: > { %s1156_s15 = sadd.s32 4294967295, %s1453_s14   ;;  %s1157_s16 = sadd.s32 4294967294, %s1453_s14   ;;  %s1453_s14 = sphi %s1511_s14, %s19_s14   ;;  %s1449_s13 = sphi %s1509_s13, %s2207_s13   ;;  %s1445_s12 = sphi %s1507_s12, %s2206_s12   ;;  %s1441_s11 = sphi %s1505_s11, %s2205_s11   ;;  %s1437_s10 = sphi %s1503_s10, %s2204_s10   ;;  %s1433_s9 = sphi %s1501_s9, %s2203_s9  }
   0x8   : > { %p53_p0 = scmp.ne.s32.totalorder %s1437_s10, %s1433_s9  ;;  %p1535_p1 = scmp.eq.s32.totalorder %s1156_s15, 0 }
   0x9   : > { %p1539_p2 = scmp.eq.s32.totalorder %s1156_s15, 1  ;;  %p106_p3 = scmp.eq.s32.totalorder %s1157_s16, 1 }
   0xa   : > { %p1545_p4 = por %p1535_p1, %p53_p0  ;;  %p1158_p5 = scmp.ge.s32.totalorder %s1453_s14, 1 }
   0xb   : > { %p1550_p6 = por %p106_p3, %p53_p0  ;;  %p113_p7 = scmp.lt.s32.totalorder %s1453_s14, 3 }
   0xc   : > { %s125_s23 = sshll.u32 %s2186_s1, 4  ;;  %p1160_p9 = scmp.ge.s32.totalorder %s1453_s14, 2  ;;  %s126_s23 = int_to_ptr.hbm [resolvable:$true] %s125_s23 }
   0xd   : > { %p1558_p8 = pnand %p1158_p5, %p113_p7  ;;  %s1455_s25 = smov [#allocation5]  }
   0xe   : > { %s127_s26 = sshll.u32 %s1455_s25, 4  ;;  %s31_s27 = sadd.s32 1, %s1449_s13  ;;  %s128_s26 = int_to_ptr.vmem [resolvable:$true] %s127_s26 }
   0xf   : > { %p1188_p10 = pneg %p1558_p8  ;;  %p33_p12 = scmp.ge.s32.totalorder %s31_s27, 2 }
  0x10   : > { %s40_s28 = sadd.s32 1, %s1441_s11  ;;  %p47_p13 = scmp.ne.s32.totalorder %s1441_s11, %s1437_s10 }
  0x11   : > { %p1189_p11 = pnand %p1188_p10, %p1535_p1  ;;  %p48_p0 = scmp.eq.s32.totalorder %s1453_s14, 0 }
  0x12   : > { %s2209_s27 = smov (%p33_p12, %s31_s27), 0  ;;  %p1580_p5 = por %p1539_p2, %p47_p13 }
  0x13   : > { %1191 = dma.hbm_to_vmem [thread:$0]  (!%p1189_p11), %s126_s23, 128, %s128_s26, [#allocation6]  }
  0x14   : > { %p1574_p3 = por %p48_p0, %p47_p13  ;;  %s35_s3 = ssub.s32 %s1449_s13, %s2209_s27 }
  0x15   : > { %p1201_p7 = scmp.lt.s32.totalorder %s1453_s14, 2  ;;  %p38_p10 = scmp.eq.s32.totalorder %s35_s3, 0 }
  0x16   : > { %s138_s4 = sand.u32 1, %s1441_s11   ;;  %s145_s8 = scalar_lea.hbm %s2185_s0, %s1449_s13 }
  0x17   : > { %s1589_s5 = scalar_select %p38_p10, %s1441_s11, %s40_s28  }
  0x18   : > { %s141_s15 = scalar_lea.vmem [#allocation2], %s138_s4  ;;  %s147_s21 = sshll.u32 %s145_s8, 4  ;;  %s148_s21 = int_to_ptr.hbm [resolvable:$true] %s147_s21 }
  0x19   : > { %s149_s16 = sshll.u32 %s141_s15, 4  ;;  %p1193_p2 = pnand %p1201_p7, %p1574_p3  ;;  %s150_s16 = int_to_ptr.vmem [resolvable:$true] %s149_s16 }
  0x1a   : > { %s139_s18 = scalar_lea.sflag [#allocation3], %s138_s4  ;;  %158 = sbr.rel (%p1558_p8) target bundleno = 402 (0x192), region = 28 }
  0x1b   : > { %1195 = dma.hbm_to_vmem [thread:$0]  (!%p1193_p2), %s148_s21, 16, %s150_s16, %s139_s18  }
  0x1c   : > { %s1600_s22 = sand.u32 (!%p1558_p8), 1, %s1437_s10  }
  0x1d   : > { %s161_s23 = scalar_lea.sflag (!%p1558_p8), [#allocation3], %s1600_s22  ;;  %s163_s25 = scalar_lea.vmem (!%p1558_p8), [#allocation2], %s1600_s22 }
  0x1f   : > { %1420 = dma.done.wait (%p1545_p4), %s161_s23, 16  }
  0x20   : > { %1422 = vsyncadd (%p1545_p4), %s161_s23, 4294967280 }
  0x21   : > { %1424 = dma.done.wait (%p1535_p1), [#allocation6], 128  }
  0x22   : > { %1426 = vsyncadd (%p1535_p1), [#allocation6], 4294967168  ;;  %v1456_v0 = vmov 12   ;;  %v1457_v1 = vmov 6   ;;  %v1458_v2 = vmov 0   ;;  %v1459_v4 = vmov 13  }
  0x23   : > { %1287 = vset.pattern.permute.xlu2 %v1456_v0  ;;  %1285 = vset.pattern.permute.xlu1 %v1457_v1  ;;  %v1613_v3 = vld [vmem:[%s163_s25] sm:$0x1]  ;;  %v1460_v5 = vmov 7   ;;  %v1461_v6 = vmov 1   ;;  %v1462_v7 = vmov 19   ;;  %v1463_v8 = vmov 18  }
  0x24   : > { %1283 = vset.pattern.permute.xlu0 %v1458_v2  ;;  %626 = vperm.xlu2 %1287, %v1613_v3   ;;  %v1464_v9 = vmov 2   ;;  %v1465_v10 = vmov 14   ;;  %v1466_v11 = vmov 8   ;;  %v1467_v12 = vmov 9   ;;  %v1641_v32 = vld [vmem:[#allocation5] sm:$0x7f] }
  0x25   : > { %413 = vperm.xlu1 %1285, %v1613_v3   ;;  %193 = vperm.xlu0 %1283, %v1613_v3   ;;  %v1468_v13 = vmov 20   ;;  %v1469_v14 = vmov 3   ;;  %v1470_v15 = vmov 16   ;;  %v1471_v16 = vmov 15   ;;  %s1163_s17 = sshll.u32 %s1600_s22, 2  ;;  %s1177_s24 = sshll.u32 %s1445_s12, 2 }
  0x26   : > { %v1472_v17 = vmov 21   ;;  %v1473_v18 = vmov 23   ;;  %v1474_v19 = vmov 4   ;;  %v1475_v20 = vmov 10   ;;  %s2116_s19 = scalar_lea.vmem [#allocation7], %s1163_s17  ;;  %s1064_s29 = scalar_lea.hbm %s2187_s2, %s1177_s24 }
  0x27   : > { %v1476_v21 = vmov 22   ;;  %v1477_v22 = vmov 5   ;;  %v1478_v23 = vmov 11   ;;  %v1479_v24 = vmov 17   ;;  %s1066_s3 = sshll.u32 %s2116_s19, 4  ;;  %s1068_s4 = sshll.u32 %s1064_s29, 4  ;;  %s1067_s3 = int_to_ptr.vmem [resolvable:$true] %s1066_s3  ;;  %s1069_s4 = int_to_ptr.hbm [resolvable:$true] %s1068_s4 }
  0x28   : > { %v1644_v34 = vrot.slane %v1641_v32, 6  ;;  %s1052_s12 = scalar_lea.sflag [#allocation4], %s1600_s22  ;;  %s1381_s6 = sshra.s32 %s1069_s4, 4  ;;  %s1382_s6 = int_to_ptr.hbm [resolvable:$true] %s1381_s6 }
  0x29   : > { %s1383_s7 = scalar_lea.hbm %s1382_s6, 4  ;;  %s1387_s16 = scalar_lea.hbm %s2187_s2, 8 }
  0x2a   : > { %p1384_p1 = scmp.ne.s32.totalorder %s1382_s6, %s1383_s7  ;;  %p1388_p11 = scmp.lt.s32.totalorder %s1382_s6, %s2187_s2 }
  0x2b   : > { %p1389_p12 = scmp.lt.s32.totalorder %s1387_s16, %s1383_s7 }
  0x2c   : > { %1288 = vset.pattern.permute.xlu2 %v1459_v4  ;;  %p1385_p4 = pnand %p1384_p1, %p1580_p5 }
  0x2d   : > { %1286 = vset.pattern.permute.xlu1 %v1460_v5  ;;  %633 = vperm.xlu2 %1288, %v1613_v3   ;;  %p1390_p13 = por %p1389_p12, %p1388_p11 }
  0x2e   : > { %420 = vperm.xlu1 %1286, %v1613_v3   ;;  %1284 = vset.pattern.permute.xlu0 %v1461_v6  ;;  %p1386_p8 = pneg %p1385_p4 }
  0x2f   : > { %203 = vperm.xlu0 %1284, %v1613_v3  }
  0x30   : > { %p1391_p0 = pnand %p1390_p13, %p1386_p8 }
  0x35   : > { %1290 = vset.pattern.permute.xlu2 %v1462_v7 }
  0x36   : > { %1289 = vset.pattern.permute.xlu1 %v1463_v8  ;;  %846 = vperm.xlu2 %1290, %v1613_v3  }
  0x37   : > { %839 = vperm.xlu1 %1289, %v1613_v3   ;;  %1291 = vset.pattern.permute.xlu0 %v1464_v9 }
  0x38   : > { %213 = vperm.xlu0 %1291, %v1613_v3  }
  0x3e   : > { %1293 = vset.pattern.permute.xlu2 %v1465_v10 }
  0x3f   : > { %1292 = vset.pattern.permute.xlu1 %v1466_v11  ;;  %643 = vperm.xlu2 %1293, %v1613_v3  }
  0x40   : > { %430 = vperm.xlu1 %1292, %v1613_v3   ;;  %1296 = vset.pattern.permute.xlu0 %v1467_v12 }
  0x41   : > { %440 = vperm.xlu0 %1296, %v1613_v3  }
  0x47   : > { %1295 = vset.pattern.permute.xlu2 %v1469_v14 }
  0x48   : > { %1294 = vset.pattern.permute.xlu1 %v1468_v13  ;;  %223 = vperm.xlu2 %1295, %v1613_v3  }
  0x49   : > { %856 = vperm.xlu1 %1294, %v1613_v3   ;;  %1301 = vset.pattern.permute.xlu0 %v1470_v15 }
  0x4a   : > { %663 = vperm.xlu0 %1301, %v1613_v3  }
  0x50   : > { %1298 = vset.pattern.permute.xlu2 %v1472_v17 }
  0x51   : > { %1297 = vset.pattern.permute.xlu1 %v1471_v16  ;;  %866 = vperm.xlu2 %1298, %v1613_v3  }
  0x52   : > { %653 = vperm.xlu1 %1297, %v1613_v3   ;;  %1306 = vset.pattern.permute.xlu0 %v1473_v18 }
  0x53   : > { %886 = vperm.xlu0 %1306, %v1613_v3  }
  0x59   : > { %1300 = vset.pattern.permute.xlu2 %v1475_v20 }
  0x5a   : > { %1299 = vset.pattern.permute.xlu1 %v1474_v19  ;;  %450 = vperm.xlu2 %1300, %v1613_v3  }
  0x5b   : > { %233 = vperm.xlu1 %1299, %v1613_v3  }
  0x62   : > { %1303 = vset.pattern.permute.xlu2 %v1477_v22 }
  0x63   : > { %1302 = vset.pattern.permute.xlu1 %v1476_v21  ;;  %243 = vperm.xlu2 %1303, %v1613_v3  }
  0x64   : > { %876 = vperm.xlu1 %1302, %v1613_v3  }
  0x6b   : > { %1305 = vset.pattern.permute.xlu2 %v1479_v24 }
  0x6c   : > { %1304 = vset.pattern.permute.xlu1 %v1478_v23  ;;  %673 = vperm.xlu2 %1305, %v1613_v3  }
  0x6d   : > { %460 = vperm.xlu1 %1304, %v1613_v3  }
  0x7e   : > { %v627_v25 = vpop.permute.xlu2 %626 }
  0x7f   : > { %v629_v55 = vperm.slane %v627_v25, 0 }
  0x81   : > { %v630_v63 = vmul.f32 %v629_v55, %v1641_v32 }
  0x83   : > { %v631_v8 = vadd.f32 %v630_v63, %v1644_v34 }
  0x87   : > { %v634_v26 = vpop.permute.xlu2 %633 }
  0x88   : > { %v636_v56 = vperm.slane %v634_v26, 0 }
  0x8a   : > { %v637_v0 = vmul.f32 %v636_v56, %v1641_v32 }
  0x8c   : > { %v639_v9 = vrot.slane %v637_v0, 1 }
  0x8e   : > { %v641_v15 = vadd.f32 %v639_v9, %v631_v8 }
  0x90   : > { %v1639_v27 = vpop.permute.xlu2 %846 }
  0x97   : > { %v414_v28 = vpop.permute.xlu1 %413  ;;  %v194_v29 = vpop.permute.xlu0 %193 }
  0x98   : > { %v416_v31 = vperm.slane %v414_v28, 0  ;;  %v196_v4 = vperm.slane %v194_v29, 0 }
  0x99   : > { %v644_v30 = vpop.permute.xlu2 %643 }
  0x9a   : > { %v417_v35 = vmul.f32 %v416_v31, %v1641_v32  ;;  %v646_v1 = vperm.slane %v644_v30, 0  ;;  %v197_v12 = vmul.f32 %v196_v4, %v1641_v32 }
  0x9c   : > { %v418_v40 = vadd.f32 %v417_v35, %v1644_v34  ;;  %v647_v10 = vmul.f32 %v646_v1, %v1641_v32  ;;  %v201_v21 = vadd.f32 %v1644_v34, %v197_v12 }
  0x9e   : > { %v649_v17 = vrot.slane %v647_v10, 2 }
  0xa0   : > { %v421_v33 = vpop.permute.xlu1 %420  ;;  %v651_v28 = vadd.f32 %v649_v17, %v641_v15 }
  0xa1   : > { %v423_v36 = vperm.slane %v421_v33, 0  ;;  %v204_v37 = vpop.permute.xlu0 %203 }
  0xa2   : > { %v224_v39 = vpop.permute.xlu2 %223  ;;  %v206_v5 = vperm.slane %v204_v37, 0 }
  0xa3   : > { %v424_v38 = vmul.f32 %v423_v36, %v1641_v32  ;;  %v226_v18 = vperm.slane %v224_v39, 0 }
  0xa4   : > { %v207_v13 = vmul.f32 %v206_v5, %v1641_v32 }
  0xa5   : > { %v426_v41 = vrot.slane %v424_v38, 1  ;;  %v227_v29 = vmul.f32 %v226_v18, %v1641_v32 }
  0xa6   : > { %v209_v22 = vrot.slane %v207_v13, 1 }
  0xa7   : > { %v428_v42 = vadd.f32 %v426_v41, %v418_v40  ;;  %v849_v40 = vperm.slane %v1639_v27, 0  ;;  %v229_v41 = vrot.slane %v227_v29, 3 }
  0xa8   : > { %v211_v33 = vadd.f32 %v209_v22, %v201_v21 }
  0xa9   : > { %v1649_v43 = vpop.permute.xlu1 %839 }
  0xaa   : > { %v214_v44 = vpop.permute.xlu0 %213 }
  0xab   : > { %v1651_v45 = vpop.permute.xlu2 %866  ;;  %v216_v14 = vperm.slane %v214_v44, 0 }
  0xad   : > { %v217_v23 = vmul.f32 %v216_v14, %v1641_v32 }
  0xaf   : > { %v219_v35 = vrot.slane %v217_v23, 2 }
  0xb2   : > { %v431_v46 = vpop.permute.xlu1 %430 }
  0xb3   : > { %v433_v47 = vperm.slane %v431_v46, 0  ;;  %v441_v48 = vpop.permute.xlu0 %440  ;;  %v842_v46 = vperm.slane %v1649_v43, 0 }
  0xb4   : > { %v443_v50 = vperm.slane %v441_v48, 0  ;;  %v451_v51 = vpop.permute.xlu2 %450 }
  0xb5   : > { %v434_v49 = vmul.f32 %v433_v47, %v1641_v32  ;;  %v453_v52 = vperm.slane %v451_v51, 0  ;;  %v221_v47 = vadd.f32 %v219_v35, %v211_v33  ;;  %v843_v55 = vmul.f32 %v842_v46, %v1641_v32 }
  0xb6   : > { %v444_v54 = vmul.f32 %v443_v50, %v1641_v32 }
  0xb7   : > { %v436_v53 = vrot.slane %v434_v49, 2  ;;  %v454_v57 = vmul.f32 %v453_v52, %v1641_v32  ;;  %v844_v4 = vadd.f32 %v843_v55, %v1644_v34 }
  0xb8   : > { %v446_v59 = vrot.slane %v444_v54, 3 }
  0xb9   : > { %v438_v58 = vadd.f32 %v436_v53, %v428_v42  ;;  %v456_v60 = vrot.slane %v454_v57, 4  ;;  %v850_v53 = vmul.f32 %v849_v40, %v1641_v32  ;;  %v231_v57 = vadd.f32 %v229_v41, %v221_v47 }
  0xba   : > { %v1484_v40 = vmov 920167782  }
  0xbb   : > { %v448_v61 = vadd.f32 %v446_v59, %v438_v58  ;;  %v857_v62 = vpop.permute.xlu1 %856  ;;  %v852_v1 = vrot.slane %v850_v53, 1 }
  0xbc   : > { %v664_v7 = vpop.permute.xlu0 %663  ;;  %v859_v51 = vperm.slane %v857_v62, 0 }
  0xbd   : > { %v1658_v3 = vadd.f32 %v456_v60, %v448_v61  ;;  %v244_v6 = vpop.permute.xlu2 %243  ;;  %v666_v11 = vperm.slane %v664_v7, 0  ;;  %v869_v60 = vperm.slane %v1651_v45, 0  ;;  %v854_v12 = vadd.f32 %v852_v1, %v844_v4 }
  0xbe   : > { %v246_v36 = vperm.slane %v244_v6, 0  ;;  %v860_v61 = vmul.f32 %v859_v51, %v1641_v32 }
  0xbf   : > { %v667_v20 = vmul.f32 %v666_v11, %v1641_v32  ;;  %v1688_v7 = vmul.f32 %v869_v60, %v1641_v32 }
  0xc0   : > { %v247_v48 = vmul.f32 %v246_v36, %v1641_v32  ;;  %v862_v8 = vrot.slane %v860_v61, 2 }
  0xc1   : > { %v669_v31 = vrot.slane %v667_v20, 4  ;;  %v872_v17 = vrot.slane %v1688_v7, 3 }
  0xc2   : > { %v249_v56 = vrot.slane %v247_v48, 5  ;;  %v1699_v18 = vadd.f32 %v862_v8, %v854_v12 }
  0xc4   : > { %v654_v16 = vpop.permute.xlu1 %653 }
  0xc5   : > { %v656_v19 = vperm.slane %v654_v16, 0  ;;  %v1694_v11 = vpop.permute.xlu0 %886 }
  0xc6   : > { %v674_v25 = vpop.permute.xlu2 %673  ;;  %v889_v20 = vperm.slane %v1694_v11, 0 }
  0xc7   : > { %v657_v24 = vmul.f32 %v656_v19, %v1641_v32  ;;  %v676_v26 = vperm.slane %v674_v25, 0  ;;  %v1480_v25 = vmov 683565275  }
  0xc9   : > { %v659_v30 = vrot.slane %v657_v24, 3  ;;  %v677_v37 = vmul.f32 %v676_v26, %v1641_v32 }
  0xcb   : > { %v661_v38 = vadd.f32 %v659_v30, %v651_v28  ;;  %v679_v39 = vrot.slane %v677_v37, 5  ;;  %v1481_v28 = vmov 2475754826   ;;  %v1482_v30 = vmov 2131351028  }
  0xcc   : > { %v1483_v37 = vmov 2102212464  }
  0xcd   : > { %v671_v42 = vadd.f32 %v669_v31, %v661_v38  ;;  %v234_v44 = vpop.permute.xlu1 %233 }
  0xce   : > { %v236_v49 = vperm.slane %v234_v44, 0  ;;  %v1485_v44 = vmov 1326507024  }
  0xcf   : > { %v1673_v50 = vadd.f32 %v679_v39, %v671_v42 }
  0xd0   : > { %v237_v52 = vmul.f32 %v236_v49, %v1641_v32 }
  0xd1   : > { %v682_v54 = vand.u32 2147483647, %v1673_v50  ;;  %v685_v27 = vand.u32 2139095040, %v1673_v50 }
  0xd2   : > { %v239_v43 = vrot.slane %v237_v52, 4 }
  0xd3   : > { %v686_v58 = vshrl.u32 %v685_v27, 23  ;;  %v689_v59 = vand.u32 8388607, %v682_v54 }
  0xd4   : > { %v241_v62 = vadd.f32 %v239_v43, %v231_v57 }
  0xd5   : > { %v1170_v63 = vadd.s32 4294967169, %v686_v58  ;;  %v690_v0 = vor.u32 8388608, %v689_v59 }
  0xd6   : > { %v1685_v5 = vadd.f32 %v249_v56, %v241_v62  ;;  %v877_v15 = vpop.permute.xlu1 %876 }
  0xd7   : > { %v692_v6 = vadd.s32 1, %v1170_v63  ;;  %v1692_v45 = vshll.u32 %v690_v0, 8  ;;  %v879_v24 = vperm.slane %v877_v15, 0 }
  0xd8   : > { %v252_v9 = vand.u32 2147483647, %v1685_v5  ;;  %v255_v10 = vand.u32 2139095040, %v1685_v5 }
  0xd9   : > { %vm693_vm0 = vcmp.gt.s32.totalorder %v692_v6, 0  ;;  %v1703_v22 = vand.u32 65535, %v1692_v45  ;;  %v732_v1 = vshrl.u32 %v1692_v45, 16 }
  0xda   : > { %v694_v13 = vsel %vm693_vm0, %v692_v6, 0  ;;  %v256_v14 = vshrl.u32 %v255_v10, 23  ;;  %v259_v34 = vand.u32 8388607, %v252_v9 }
  0xdb   : > { %v696_v16 = vand.u32 31, %v694_v13  ;;  %v695_v19 = vshrl.u32 %v694_v13, 5 }
  0xdc   : > { %v1164_v23 = vadd.s32 4294967169, %v256_v14  ;;  %v260_v33 = vor.u32 8388608, %v259_v34  ;;  %v1728_v14 = vmul.f32 %v879_v24, %v1641_v32  ;;  %v1731_v34 = vmul.f32 %v889_v20, %v1641_v32 }
  0xdd   : > { %v697_v21 = vsub.s32 32, %v696_v16  ;;  %v699_v26 = vshll.u32 %v1480_v25, %v696_v16  ;;  %v702_v29 = vshll.u32 %v1481_v28, %v696_v16  ;;  %v705_v31 = vshll.u32 %v1482_v30, %v696_v16 }
  0xde   : > { %v708_v39 = vshll.u32 %v1483_v37, %v696_v16  ;;  %v711_v42 = vshll.u32 %v1484_v40, %v696_v16  ;;  %vm714_vm1 = vcmp.lt.s32.totalorder %v695_v19, 1  ;;  %v262_v51 = vadd.s32 1, %v1164_v23 }
  0xdf   : > { %v700_v35 = vshrl.u32 %v1481_v28, %v697_v21  ;;  %v703_v36 = vshrl.u32 %v1482_v30, %v697_v21  ;;  %v706_v38 = vshrl.u32 %v1483_v37, %v697_v21  ;;  %v709_v41 = vshrl.u32 %v1484_v40, %v697_v21 }
  0xe0   : > { %v712_v46 = vshrl.u32 %v1485_v44, %v697_v21  ;;  %vm715_vm2 = vcmp.lt.s32.totalorder %v695_v19, 2  ;;  %vm717_vm3 = vcmp.lt.s32.totalorder %v695_v19, 4  ;;  %v698_v27 = vshrl.u32 %v1480_v25, %v697_v21 }
  0xe1   : > { %v701_v47 = vor.u32 %v700_v35, %v699_v26  ;;  %v704_v48 = vor.u32 %v703_v36, %v702_v29  ;;  %v707_v49 = vor.u32 %v706_v38, %v705_v31  ;;  %v710_v52 = vor.u32 %v709_v41, %v708_v39 }
  0xe2   : > { %v713_v53 = vor.u32 %v712_v46, %v711_v42  ;;  %vm716_vm4 = vcmp.lt.s32.totalorder %v695_v19, 3  ;;  %vm263_vm5 = vcmp.gt.s32.totalorder %v262_v51, 0  ;;  %v1725_v13 = vshll.u32 %v260_v33, 8 }
  0xe3   : > { %v719_v55 = vsel %vm717_vm3, %v707_v49, 2102212464  ;;  %v722_v56 = vsel %vm714_vm1, %v701_v47, %v704_v48  ;;  %v726_v57 = vsel %vm714_vm1, %v704_v48, %v707_v49  ;;  %v723_v43 = vsel %vm717_vm3, %v710_v52, 920167782 }
  0xe4   : > { %v727_v58 = vsel %vm717_vm3, %v713_v53, 1326507024  ;;  %v718_v59 = vsel %vm714_vm1, %v698_v27, %v701_v47  ;;  %v720_v60 = vsel %vm716_vm4, %v704_v48, %v719_v55  ;;  %v724_v61 = vsel %vm716_vm4, %v707_v49, %v723_v43 }
  0xe5   : > { %v728_v62 = vsel %vm716_vm4, %v710_v52, %v727_v58  ;;  %v725_v63 = vsel %vm715_vm2, %v722_v56, %v724_v61  ;;  %v264_v4 = vsel %vm263_vm5, %v262_v51, 0  ;;  %v1723_v12 = vsel %vm715_vm2, %v718_v59, %v720_v60 }
  0xe6   : > { %v729_v0 = vsel %vm715_vm2, %v726_v57, %v728_v62  ;;  %v755_v10 = vand.u32 65535, %v725_v63  ;;  %v756_v11 = vshrl.u32 %v725_v63, 16  ;;  %v1734_v21 = vshrl.u32 %v264_v4, 5 }
  0xe7   : > { %v733_v6 = vand.u32 65535, %v729_v0  ;;  %v734_v8 = vshrl.u32 %v729_v0, 16  ;;  %v266_v23 = vand.u32 31, %v264_v4 }
  0xe8   : > { %v758_v19 = vmul.u32 %v756_v11, %v1703_v22  ;;  %v759_v31 = vmul.u32 %v755_v10, %v732_v1  ;;  %v757_v24 = vmul.u32 %v755_v10, %v1703_v22  ;;  %v760_v36 = vmul.u32 %v756_v11, %v732_v1 }
  0xe9   : > { %v736_v15 = vmul.u32 %v734_v8, %v1703_v22  ;;  %v737_v16 = vmul.u32 %v733_v6, %v732_v1  ;;  %v735_v26 = vmul.u32 %v733_v6, %v1703_v22  ;;  %v738_v29 = vmul.u32 %v734_v8, %v732_v1 }
  0xea   : > { %v761_v39 = vshll.u32 %v758_v19, 16  ;;  %v762_v41 = vshrl.u32 %v758_v19, 16  ;;  %v763_v46 = vshll.u32 %v759_v31, 16  ;;  %v1739_v47 = vsub.s32 32, %v266_v23 }
  0xeb   : > { %v739_v33 = vshll.u32 %v736_v15, 16  ;;  %v740_v35 = vshrl.u32 %v736_v15, 16  ;;  %v741_v38 = vshll.u32 %v737_v16, 16  ;;  %v742_v20 = vshrl.u32 %v737_v16, 16 }
  0xec   : > { %v764_v49 = vshrl.u32 %v759_v31, 16  ;;  %vm765_vm7 = vc.u32 %v757_v24, %v761_v39  ;;  %v767_v51 = vadd.s32 %v761_v39, %v757_v24  ;;  %v269_v22 = vshll.u32 %v1480_v25, %v266_v23 }
  0xed   : > { %vm743_vm6 = vc.u32 %v735_v26, %v739_v33  ;;  %v745_v42 = vadd.s32 %v739_v33, %v735_v26  ;;  %v766_v53 = vsel %vm765_vm7, 1, %v1458_v2  ;;  %v272_v56 = vshll.u32 %v1481_v28, %v266_v23 }
  0xee   : > { %v744_v48 = vsel %vm743_vm6, 1, %v1458_v2  ;;  %v768_v55 = vadd.s32 %v766_v53, %v760_v36  ;;  %vm769_vm9 = vc.u32 %v767_v51, %v763_v46  ;;  %v270_v58 = vshrl.u32 %v1481_v28, %v1739_v47 }
  0xef   : > { %v746_v52 = vadd.s32 %v744_v48, %v738_v29  ;;  %vm747_vm8 = vc.u32 %v745_v42, %v741_v38  ;;  %v770_v43 = vsel %vm769_vm9, 1, %v1458_v2  ;;  %v273_v59 = vshrl.u32 %v1482_v30, %v1739_v47 }
  0xf0   : > { %v748_v27 = vsel %vm747_vm8, 1, %v1458_v2  ;;  %v772_v60 = vadd.s32 %v770_v43, %v768_v55  ;;  %v275_v61 = vshll.u32 %v1482_v30, %v266_v23  ;;  %v276_v62 = vshrl.u32 %v1483_v37, %v1739_v47 }
  0xf1   : > { %v750_v57 = vadd.s32 %v748_v27, %v746_v52  ;;  %v278_v63 = vshll.u32 %v1483_v37, %v266_v23  ;;  %v1755_v1 = vor.u32 %v270_v58, %v269_v22  ;;  %v1757_v4 = vor.u32 %v273_v59, %v272_v56 }
  0xf2   : > { %v279_v6 = vshrl.u32 %v1484_v40, %v1739_v47  ;;  %v773_v8 = vadd.s32 %v772_v60, %v762_v41  ;;  %v277_v10 = vor.u32 %v276_v62, %v275_v61  ;;  %v281_v11 = vshll.u32 %v1484_v40, %v266_v23 }
  0xf3   : > { %v751_v0 = vadd.s32 %v750_v57, %v740_v35  ;;  %v282_v15 = vshrl.u32 %v1485_v44, %v1739_v47  ;;  %v1766_v26 = vadd.s32 %v767_v51, %v763_v46  ;;  %vm284_vm10 = vcmp.lt.s32.totalorder %v1734_v21, 1 }
  0xf4   : > { %v280_v29 = vor.u32 %v279_v6, %v278_v63  ;;  %v774_v19 = vadd.s32 %v773_v8, %v764_v49  ;;  %vm287_vm11 = vcmp.lt.s32.totalorder %v1734_v21, 4  ;;  %v292_v33 = vsel %vm284_vm10, %v1755_v1, %v1757_v4 }
  0xf5   : > { %v1764_v16 = vadd.s32 %v751_v0, %v742_v20  ;;  %v283_v31 = vor.u32 %v282_v15, %v281_v11  ;;  %vm286_vm13 = vcmp.lt.s32.totalorder %v1734_v21, 3  ;;  %v882_v35 = vrot.slane %v1728_v14, 4 }
  0xf6   : > { %v293_v23 = vsel %vm287_vm11, %v280_v29, 920167782  ;;  %v778_v24 = vadd.s32 1, %v774_v19  ;;  %vm285_vm14 = vcmp.lt.s32.totalorder %v1734_v21, 2  ;;  %v296_v38 = vsel %vm284_vm10, %v1757_v4, %v277_v10 }
  0xf7   : > { %vm777_vm12 = vc.u32 %v1764_v16, %v1766_v26  ;;  %v294_v36 = vsel %vm286_vm13, %v277_v10, %v293_v23  ;;  %v775_v20 = vmul.u32 %v1692_v45, %v1723_v12  ;;  %v297_v41 = vsel %vm287_vm11, %v283_v31, 1326507024 }
  0xf8   : > { %v295_v39 = vsel %vm285_vm14, %v292_v33, %v294_v36  ;;  %v301_v14 = vand.u32 65535, %v1725_v13  ;;  %v779_v42 = vsel %vm777_vm12, %v778_v24, %v774_v19  ;;  %v298_v46 = vsel %vm286_vm13, %v280_v29, %v297_v41 }
  0xf9   : > { %v325_v48 = vand.u32 65535, %v295_v39  ;;  %v326_v49 = vshrl.u32 %v295_v39, 16  ;;  %v780_v51 = vadd.s32 %v779_v42, %v775_v20  ;;  %v299_v52 = vsel %vm285_vm14, %v296_v38, %v298_v46 }
  0xfa   : > { %v302_v45 = vshrl.u32 %v1725_v13, 16  ;;  %v303_v12 = vand.u32 65535, %v299_v52  ;;  %v304_v53 = vshrl.u32 %v299_v52, 16  ;;  %v874_v27 = vadd.f32 %v872_v17, %v1699_v18 }
  0xfb   : > { %v328_v22 = vmul.u32 %v326_v49, %v301_v14  ;;  %v781_v55 = vadd.s32 536870912, %v780_v51  ;;  %v892_v59 = vrot.slane %v1731_v34, 5  ;;  %v268_v61 = vshrl.u32 %v1480_v25, %v1739_v47 }
  0xfc   : > { %v329_v56 = vmul.u32 %v325_v48, %v302_v45  ;;  %v306_v57 = vmul.u32 %v304_v53, %v301_v14  ;;  %v307_v43 = vmul.u32 %v303_v12, %v302_v45  ;;  %v884_v58 = vadd.f32 %v882_v35, %v874_v27 }
  0xfd   : > { %v1802_v60 = vshrl.u32 %v781_v55, 30  ;;  %v327_v62 = vmul.u32 %v325_v48, %v301_v14  ;;  %v331_v63 = vshll.u32 %v328_v22, 16  ;;  %v305_v0 = vmul.u32 %v303_v12, %v301_v14 }
  0xfe   : > { %v308_v6 = vmul.u32 %v304_v53, %v302_v45  ;;  %v309_v8 = vshll.u32 %v306_v57, 16  ;;  %v330_v11 = vmul.u32 %v326_v49, %v302_v45  ;;  %v311_v17 = vshll.u32 %v307_v43, 16 }
  0xff   : > { %v783_v7 = vshll.u32 %v1802_v60, 30  ;;  %v333_v18 = vshll.u32 %v329_v56, 16  ;;  %vm335_vm15 = vc.u32 %v327_v62, %v331_v63  ;;  %v337_v29 = vadd.s32 %v331_v63, %v327_v62 }
 0x100   : > { %vm313_vm0 = vc.u32 %v305_v0, %v309_v8  ;;  %v315_v15 = vadd.s32 %v309_v8, %v305_v0  ;;  %v336_v34 = vsel %vm335_vm15, 1, %v1458_v2  ;;  %v289_v47 = vsel %vm287_vm11, %v277_v10, 2102212464 }
 0x101   : > { %v784_v19 = vsub.s32 %v780_v51, %v783_v7  ;;  %v314_v31 = vsel %vm313_vm0, 1, %v1458_v2  ;;  %v338_v33 = vadd.s32 %v336_v34, %v330_v11  ;;  %vm339_vm2 = vc.u32 %v337_v29, %v333_v18 }
 0x102   : > { %v316_v23 = vadd.s32 %v314_v31, %v308_v6  ;;  %vm317_vm1 = vc.u32 %v315_v15, %v311_v17  ;;  %v1811_v35 = vadd.f32 %v892_v59, %v884_v58  ;;  %v288_v38 = vsel %vm284_vm10, %v268_v61, %v1755_v1 }
 0x103   : > { %vm785_vm3 = vcmp.lt.s32.totalorder %v784_v19, 0  ;;  %v786_v24 = vsub.s32 0, %v784_v19  ;;  %v318_v36 = vsel %vm317_vm1, 1, %v1458_v2  ;;  %v310_v20 = vshrl.u32 %v306_v57, 16 }
 0x104   : > { %v320_v39 = vadd.s32 %v318_v36, %v316_v23  ;;  %v340_v10 = vsel %vm339_vm2, 1, %v1458_v2  ;;  %v290_v14 = vsel %vm286_vm13, %v1757_v4, %v289_v47  ;;  %v332_v42 = vshrl.u32 %v328_v22, 16 }
 0x105   : > { %v787_v41 = vsel %vm785_vm3, %v786_v24, %v784_v19  ;;  %v342_v46 = vadd.s32 %v340_v10, %v338_v33  ;;  %v312_v49 = vshrl.u32 %v307_v43, 16  ;;  %v898_v52 = vand.u32 2139095040, %v1811_v35 }
 0x106   : > { %v788_v48 = vclz %v787_v41  ;;  %v321_v51 = vadd.s32 %v320_v39, %v310_v20  ;;  %v334_v45 = vshrl.u32 %v329_v56, 16  ;;  %v1824_v27 = vadd.s32 %v337_v29, %v333_v18 }
 0x107   : > { %v343_v12 = vadd.s32 %v342_v46, %v332_v42  ;;  %v899_v55 = vshrl.u32 %v898_v52, 23  ;;  %v291_v57 = vsel %vm285_vm14, %v288_v38, %v290_v14  ;;  %v776_v63 = vadd.s32 %v1766_v26, %v1764_v16  ;;  %v461_v42 = vpop.permute.xlu1 %460 }
 0x108   : > { %v1171_v53 = vadd.s32 4294967294, %v788_v48  ;;  %v1822_v1 = vadd.s32 %v321_v51, %v312_v49  ;;  %v345_v61 = vmul.u32 %v1725_v13, %v291_v57  ;;  %v895_v21 = vand.u32 2147483647, %v1811_v35 }
 0x109   : > { %v344_v58 = vadd.s32 %v343_v12, %v334_v45  ;;  %v1173_v4 = vadd.s32 4294967169, %v899_v55  ;;  %vm1866_vm8 = vcmp.le.f32.partialorder %v682_v54, 0.7853982  ;;  %vm684_vm9 = vcmp.lt.s32.totalorder %v1673_v50, 0 }
 0x10a   : > { %vm1172_vm4 = vcmp.lt.s32.totalorder %v1171_v53, 0  ;;  %vm347_vm5 = vc.u32 %v1822_v1, %v1824_v27  ;;  %v902_v34 = vand.u32 8388607, %v895_v21  ;;  %vm254_vm1 = vcmp.lt.s32.totalorder %v1685_v5, 0 }
 0x10b   : > { %v791_v22 = vsel %vm1172_vm4, 0, %v1171_v53  ;;  %v348_v43 = vadd.s32 1, %v344_v58  ;;  %v905_v62 = vadd.s32 1, %v1173_v4  ;;  %vm1924_vm2 = vcmp.le.f32.partialorder %v252_v9, 0.7853982 }
 0x10c   : > { %v792_v59 = vsub.s32 32, %v791_v22  ;;  %v796_v56 = vsub.s32 4294967266, %v791_v22  ;;  %v793_v15 = vshll.u32 %v784_v19, %v791_v22  ;;  %v903_v23 = vor.u32 8388608, %v902_v34 }
 0x10d   : > { %v349_v0 = vsel %vm347_vm5, %v348_v43, %v344_v58  ;;  %vm906_vm6 = vcmp.gt.s32.totalorder %v905_v62, 0  ;;  %v463_v58 = vperm.slane %v461_v42, 0 }
 0x10e   : > { %v797_v6 = vadd.s32 127, %v796_v56  ;;  %v350_v8 = vadd.s32 %v349_v0, %v345_v61  ;;  %v794_v11 = vshrl.u32 %v776_v63, %v792_v59  ;;  %v907_v7 = vsel %vm906_vm6, %v905_v62, 0 }
 0x10f   : > { %v909_v29 = vand.u32 31, %v907_v7  ;;  %v1841_v24 = vshrl.u32 %v907_v7, 5  ;;  %v1872_v56 = vshll.u32 %v903_v23, 8  ;;  %v346_v0 = vadd.s32 %v1824_v27, %v1822_v1 }
 0x110   : > { %v798_v17 = vshll.u32 %v797_v6, 23  ;;  %v351_v18 = vadd.s32 536870912, %v350_v8  ;;  %v795_v31 = vor.u32 %v794_v11, %v793_v15  ;;  %v464_v6 = vmul.f32 %v463_v58, %v1641_v32 }
 0x111   : > { %v1838_v16 = vsub.s32 32, %v909_v29  ;;  %v912_v10 = vshll.u32 %v1480_v25, %v909_v29  ;;  %v921_v14 = vshll.u32 %v1483_v37, %v909_v29  ;;  %v915_v48 = vshll.u32 %v1481_v28, %v909_v29 }
 0x112   : > { %v799_v13 = vor.u32 4788187, %v798_v17  ;;  %v1836_v47 = vshrl.u32 %v351_v18, 30  ;;  %v802_v39 = vcvt.s32.f32 %v795_v31  ;;  %v918_v49 = vshll.u32 %v1482_v30, %v909_v29 }
 0x113   : > { %v916_v19 = vshrl.u32 %v1482_v30, %v1838_v16  ;;  %v919_v38 = vshrl.u32 %v1483_v37, %v1838_v16  ;;  %v922_v20 = vshrl.u32 %v1484_v40, %v1838_v16  ;;  %v913_v41 = vshrl.u32 %v1481_v28, %v1838_v16 }
 0x114   : > { %v353_v26 = vshll.u32 %v1836_v47, 30  ;;  %v800_v33 = vand.u32 2147483647, %v799_v13  ;;  %v924_v45 = vshll.u32 %v1484_v40, %v909_v29  ;;  %v925_v12 = vshrl.u32 %v1485_v44, %v1838_v16 }
 0x115   : > { %v923_v52 = vor.u32 %v922_v20, %v921_v14  ;;  %v1858_v55 = vor.u32 %v916_v19, %v915_v48  ;;  %v1860_v57 = vor.u32 %v919_v38, %v918_v49  ;;  %v1862_v22 = vor.u32 %v913_v41, %v912_v10 }
 0x116   : > { %v354_v36 = vsub.s32 %v350_v8, %v353_v26  ;;  %v803_v51 = vmul.f32 %v802_v39, %v800_v33  ;;  %v926_v43 = vor.u32 %v925_v12, %v924_v45  ;;  %vm930_vm10 = vcmp.lt.s32.totalorder %v1841_v24, 4 }
 0x117   : > { %vm927_vm11 = vcmp.lt.s32.totalorder %v1841_v24, 1  ;;  %v936_v63 = vsel %vm930_vm10, %v923_v52, 920167782  ;;  %vm929_vm12 = vcmp.lt.s32.totalorder %v1841_v24, 3  ;;  %vm928_vm14 = vcmp.lt.s32.totalorder %v1841_v24, 2 }
 0x118   : > { %vm355_vm7 = vcmp.lt.s32.totalorder %v354_v36, 0  ;;  %v356_v46 = vsub.s32 0, %v354_v36  ;;  %v804_v61 = vxor.u32 2147483648, %v803_v51  ;;  %v939_v54 = vsel %vm927_vm11, %v1858_v55, %v1860_v57 }
 0x119   : > { %v935_v8 = vsel %vm927_vm11, %v1862_v22, %v1858_v55  ;;  %v937_v11 = vsel %vm929_vm12, %v1860_v57, %v936_v63  ;;  %v940_v1 = vsel %vm930_vm10, %v926_v43, 1326507024  ;;  %v944_v32 = vand.u32 65535, %v1872_v56 }
 0x11a   : > { %v357_v53 = vsel %vm355_vm7, %v356_v46, %v354_v36  ;;  %v941_v7 = vsel %vm929_vm12, %v923_v52, %v940_v1  ;;  %v805_v17 = vsel %vm684_vm9, %v804_v61, %v803_v51  ;;  %v938_v29 = vsel %vm928_vm14, %v935_v8, %v937_v11 }
 0x11b   : > { %v358_v4 = vclz %v357_v53  ;;  %v942_v34 = vsel %vm928_vm14, %v939_v54, %v941_v7  ;;  %v945_v13 = vshrl.u32 %v1872_v56, 16  ;;  %v466_v38 = vrot.slane %v464_v6, 5 }
 0x11c   : > { %v946_v31 = vand.u32 65535, %v942_v34  ;;  %v947_v26 = vshrl.u32 %v942_v34, 16  ;;  %v1908_v20 = vsel %vm1866_vm8, %v1673_v50, %v805_v17  ;;  %v969_v42 = vshrl.u32 %v938_v29, 16 }
 0x11d   : > { %v1165_v62 = vadd.s32 4294967294, %v358_v4  ;;  %v1912_v49 = vmul.f32 %v1908_v20, %v1908_v20  ;;  %v968_v51 = vand.u32 65535, %v938_v29  ;;  %v1915_v52 = vadd.f32 %v466_v38, %v1658_v3 }
 0x11e   : > { %v949_v39 = vmul.u32 %v947_v26, %v944_v32  ;;  %v950_v14 = vmul.u32 %v946_v31, %v945_v13  ;;  %v948_v46 = vmul.u32 %v946_v31, %v944_v32  ;;  %v951_v45 = vmul.u32 %v947_v26, %v945_v13 }
 0x11f   : > { %vm1166_vm13 = vcmp.lt.s32.totalorder %v1165_v62, 0  ;;  %v971_v61 = vmul.u32 %v969_v42, %v944_v32  ;;  %v818_v63 = vmul.f32 -0.00019511016, %v1912_v49  ;;  %v972_v6 = vmul.u32 %v968_v51, %v945_v13 }
 0x120   : > { %v361_v27 = vsel %vm1166_vm13, 0, %v1165_v62  ;;  %v952_v48 = vshll.u32 %v949_v39, 16  ;;  %v954_v12 = vshll.u32 %v950_v14, 16  ;;  %v970_v8 = vmul.u32 %v968_v51, %v944_v32 }
 0x121   : > { %v362_v18 = vsub.s32 32, %v361_v27  ;;  %v366_v15 = vsub.s32 4294967266, %v361_v27  ;;  %v363_v33 = vshll.u32 %v354_v36, %v361_v27  ;;  %v974_v11 = vshll.u32 %v971_v61, 16 }
 0x122   : > { %vm956_vm15 = vc.u32 %v948_v46, %v952_v48  ;;  %v958_v53 = vadd.s32 %v952_v48, %v948_v46  ;;  %v811_v1 = vmul.f32 -0.001358992, %v1912_v49  ;;  %v472_v17 = vand.u32 2139095040, %v1915_v52 }
 0x123   : > { %v364_v23 = vshrl.u32 %v346_v0, %v362_v18  ;;  %v367_v19 = vadd.s32 127, %v366_v15  ;;  %v957_v43 = vsel %vm956_vm15, 1, %v1458_v2  ;;  %v953_v18 = vshrl.u32 %v949_v39, 16 }
 0x124   : > { %v959_v62 = vadd.s32 %v957_v43, %v951_v45  ;;  %vm960_vm0 = vc.u32 %v958_v53, %v954_v12  ;;  %v973_v15 = vmul.u32 %v969_v42, %v945_v13  ;;  %vm978_vm3 = vc.u32 %v970_v8, %v974_v11 }
 0x125   : > { %v365_v10 = vor.u32 %v364_v23, %v363_v33  ;;  %v368_v41 = vshll.u32 %v367_v19, 23  ;;  %v961_v54 = vsel %vm960_vm0, 1, %v1458_v2  ;;  %v980_v34 = vadd.s32 %v974_v11, %v970_v8 }
 0x126   : > { %v963_v3 = vadd.s32 %v961_v54, %v959_v62  ;;  %v819_v29 = vadd.f32 0.008332121, %v818_v63  ;;  %v976_v31 = vshll.u32 %v972_v6, 16  ;;  %v979_v26 = vsel %vm978_vm3, 1, %v1458_v2 }
 0x127   : > { %v369_v36 = vor.u32 4788187, %v368_v41  ;;  %v372_v4 = vcvt.s32.f32 %v365_v10  ;;  %v806_v33 = vsub.s32 4, %v1802_v60  ;;  %v911_v9 = vshrl.u32 %v1480_v25, %v1838_v16 }
 0x128   : > { %v964_v23 = vadd.s32 %v963_v3, %v953_v18  ;;  %v981_v19 = vadd.s32 %v979_v26, %v973_v15  ;;  %v932_v38 = vsel %vm930_vm10, %v1860_v57, 2102212464  ;;  %vm982_vm4 = vc.u32 %v980_v34, %v976_v31 }
 0x129   : > { %v370_v58 = vand.u32 2147483647, %v369_v36  ;;  %v473_v39 = vshrl.u32 %v472_v17, 23  ;;  %v931_v10 = vsel %vm927_vm11, %v911_v9, %v1862_v22  ;;  %v955_v41 = vshrl.u32 %v950_v14, 16 }
 0x12a   : > { %v983_v16 = vsel %vm982_vm4, 1, %v1458_v2  ;;  %v469_v42 = vand.u32 2147483647, %v1915_v52  ;;  %v812_v46 = vadd.f32 0.041655596, %v811_v1  ;;  %v820_v48 = vmul.f32 %v819_v29, %v1912_v49 }
 0x12b   : > { %v373_v0 = vmul.f32 %v372_v4, %v370_v58  ;;  %v975_v36 = vshrl.u32 %v971_v61, 16  ;;  %v985_v51 = vadd.s32 %v983_v16, %v981_v19  ;;  %v933_v57 = vsel %vm929_vm12, %v1858_v55, %v932_v38 }
 0x12c   : > { %v1956_v12 = vadd.s32 %v964_v23, %v955_v41  ;;  %v1167_v22 = vadd.s32 4294967169, %v473_v39  ;;  %v977_v14 = vshrl.u32 %v972_v6, 16  ;;  %v807_v58 = vsel %vm684_vm9, %v806_v33, %v1802_v60 }
 0x12d   : > { %v374_v7 = vxor.u32 2147483648, %v373_v0  ;;  %v986_v53 = vadd.s32 %v985_v51, %v975_v36  ;;  %v1961_v4 = vadd.s32 %v980_v34, %v976_v31  ;;  %v813_v61 = vmul.f32 %v812_v46, %v1912_v49 }
 0x12e   : > { %v479_v43 = vadd.s32 1, %v1167_v22  ;;  %v821_v62 = vadd.f32 -0.16666654, %v820_v48  ;;  %v934_v63 = vsel %vm928_vm14, %v931_v10, %v933_v57  ;;  %v476_v54 = vand.u32 8388607, %v469_v42 }
 0x12f   : > { %v375_v32 = vsel %vm254_vm1, %v374_v7, %v373_v0  ;;  %v987_v0 = vadd.s32 %v986_v53, %v977_v14  ;;  %vm990_vm5 = vc.u32 %v1956_v12, %v1961_v4  ;;  %v988_v3 = vmul.u32 %v1872_v56, %v934_v63 }
 0x130   : > { %v1938_v13 = vsel %vm1924_vm2, %v1685_v5, %v375_v32  ;;  %vm480_vm6 = vcmp.gt.s32.totalorder %v479_v43, 0  ;;  %v809_v11 = vsel %vm1866_vm8, 0, %v807_v58  ;;  %v814_v24 = vadd.f32 -0.4999988, %v813_v61 }
 0x131   : > { %v1951_v45 = vmul.f32 %v1938_v13, %v1938_v13  ;;  %v991_v60 = vadd.s32 1, %v987_v0  ;;  %v481_v6 = vsel %vm480_vm6, %v479_v43, 0  ;;  %v822_v1 = vmul.f32 %v821_v62, %v1912_v49 }
 0x132   : > { %v483_v8 = vand.u32 31, %v481_v6  ;;  %v477_v15 = vor.u32 8388608, %v476_v54  ;;  %v1975_v29 = vshrl.u32 %v481_v6, 5  ;;  %v815_v48 = vmul.f32 %v814_v24, %v1912_v49 }
 0x133   : > { %v388_v55 = vmul.f32 -0.00019511016, %v1951_v45  ;;  %v992_v7 = vsel %vm990_vm5, %v991_v60, %v987_v0  ;;  %v823_v36 = vadd.f32 1.0, %v822_v1  ;;  %v376_v14 = vsub.s32 4, %v1836_v47 }
 0x134   : > { %v993_v18 = vadd.s32 %v992_v7, %v988_v3  ;;  %v484_v34 = vsub.s32 32, %v483_v8  ;;  %v486_v32 = vshll.u32 %v1480_v25, %v483_v8  ;;  %v489_v31 = vshll.u32 %v1481_v28, %v483_v8 }
 0x135   : > { %v389_v17 = vadd.f32 0.008332121, %v388_v55  ;;  %v492_v56 = vshll.u32 %v1482_v30, %v483_v8  ;;  %v495_v9 = vshll.u32 %v1483_v37, %v483_v8  ;;  %v498_v38 = vshll.u32 %v1484_v40, %v483_v8 }
 0x136   : > { %v994_v26 = vadd.s32 536870912, %v993_v18  ;;  %v487_v59 = vshrl.u32 %v1481_v28, %v484_v34  ;;  %v490_v33 = vshrl.u32 %v1482_v30, %v484_v34  ;;  %v493_v23 = vshrl.u32 %v1483_v37, %v484_v34 }
 0x137   : > { %v496_v19 = vshrl.u32 %v1484_v40, %v484_v34  ;;  %v499_v39 = vshrl.u32 %v1485_v44, %v484_v34  ;;  %v826_v37 = vadd.s32 3, %v809_v11  ;;  %v390_v40 = vmul.f32 %v389_v17, %v1951_v45 }
 0x138   : > { %v1987_v10 = vshrl.u32 %v994_v26, 30  ;;  %v1989_v41 = vor.u32 %v487_v59, %v486_v32  ;;  %v1991_v16 = vor.u32 %v490_v33, %v489_v31  ;;  %v1993_v46 = vor.u32 %v493_v23, %v492_v56 }
 0x139   : > { %v497_v28 = vor.u32 %v496_v19, %v495_v9  ;;  %v500_v30 = vor.u32 %v499_v39, %v498_v38  ;;  %vm501_vm7 = vcmp.lt.s32.totalorder %v1975_v29, 1  ;;  %vm504_vm8 = vcmp.lt.s32.totalorder %v1975_v29, 4 }
 0x13a   : > { %v996_v51 = vshll.u32 %v1987_v10, 30  ;;  %v2000_v44 = vshll.u32 %v477_v15, 8  ;;  %vm503_vm9 = vcmp.lt.s32.totalorder %v1975_v29, 3  ;;  %v509_v49 = vsel %vm501_vm7, %v1989_v41, %v1991_v16 }
 0x13b   : > { %v510_v22 = vsel %vm504_vm8, %v497_v28, 920167782  ;;  %v513_v58 = vsel %vm501_vm7, %v1991_v16, %v1993_v46  ;;  %v514_v43 = vsel %vm504_vm8, %v500_v30, 1326507024  ;;  %v2021_v61 = vadd.f32 1.0, %v815_v48 }
 0x13c   : > { %v2002_v57 = vsub.s32 %v993_v18, %v996_v51  ;;  %v511_v53 = vsel %vm503_vm9, %v1993_v46, %v510_v22  ;;  %vm502_vm11 = vcmp.lt.s32.totalorder %v1975_v29, 2  ;;  %v2027_v63 = vmul.f32 %v823_v36, %v1908_v20 }
 0x13d   : > { %v512_v0 = vsel %vm502_vm11, %v509_v49, %v511_v53  ;;  %v515_v55 = vsel %vm503_vm9, %v497_v28, %v514_v43  ;;  %v518_v54 = vand.u32 65535, %v2000_v44  ;;  %v391_v60 = vadd.f32 -0.16666654, %v390_v40 }
 0x13e   : > { %vm998_vm10 = vcmp.lt.s32.totalorder %v2002_v57, 0  ;;  %v999_v62 = vsub.s32 0, %v2002_v57  ;;  %v516_v3 = vsel %vm502_vm11, %v513_v58, %v515_v55  ;;  %v542_v8 = vand.u32 65535, %v512_v0 }
 0x13f   : > { %v520_v24 = vand.u32 65535, %v516_v3  ;;  %v521_v1 = vshrl.u32 %v516_v3, 16  ;;  %v543_v20 = vshrl.u32 %v512_v0, 16  ;;  %v2037_v7 = vand.u32 3, %v826_v37 }
 0x140   : > { %v1000_v6 = vsel %vm998_vm10, %v999_v62, %v2002_v57  ;;  %v833_v17 = vxor.u32 2147483648, %v2021_v61  ;;  %v2043_v18 = vsel %vm254_vm1, %v376_v14, %v1836_v47  ;;  %v519_v15 = vshrl.u32 %v2000_v44, 16 }
 0x141   : > { %v1001_v11 = vclz %v1000_v6  ;;  %v830_v32 = vxor.u32 2147483648, %v2027_v63  ;;  %v989_v31 = vadd.s32 %v1961_v4, %v1956_v12  ;;  %v523_v26 = vmul.u32 %v521_v1, %v518_v54 }
 0x142   : > { %v392_v59 = vmul.f32 %v391_v60, %v1951_v45  ;;  %v485_v33 = vshrl.u32 %v1480_v25, %v484_v34  ;;  %v524_v9 = vmul.u32 %v520_v24, %v519_v15  ;;  %v545_v23 = vmul.u32 %v543_v20, %v518_v54 }
 0x143   : > { %v1174_v56 = vadd.s32 4294967294, %v1001_v11  ;;  %v522_v19 = vmul.u32 %v520_v24, %v518_v54  ;;  %v526_v38 = vshll.u32 %v523_v26, 16  ;;  %v544_v47 = vmul.u32 %v542_v8, %v518_v54 }
 0x144   : > { %v525_v28 = vmul.u32 %v521_v1, %v519_v15  ;;  %v546_v30 = vmul.u32 %v542_v8, %v519_v15  ;;  %v548_v48 = vshll.u32 %v545_v23, 16  ;;  %v547_v12 = vmul.u32 %v543_v20, %v519_v15 }
 0x145   : > { %vm1175_vm12 = vcmp.lt.s32.totalorder %v1174_v56, 0  ;;  %vm530_vm13 = vc.u32 %v522_v19, %v526_v38  ;;  %vm829_vm14 = vcmp.eq.s32.totalorder %v2037_v7, 0  ;;  %v528_v51 = vshll.u32 %v524_v9, 16 }
 0x146   : > { %v1004_v39 = vsel %vm1175_vm12, 0, %v1174_v56  ;;  %v531_v25 = vsel %vm530_vm13, 1, %v1458_v2  ;;  %v532_v34 = vadd.s32 %v526_v38, %v522_v19  ;;  %vm552_vm15 = vc.u32 %v544_v47, %v548_v48 }
 0x147   : > { %v1005_v36 = vsub.s32 32, %v1004_v39  ;;  %v1009_v37 = vsub.s32 4294967266, %v1004_v39  ;;  %v1006_v4 = vshll.u32 %v2002_v57, %v1004_v39  ;;  %v533_v22 = vadd.s32 %v531_v25, %v525_v28 }
 0x148   : > { %vm534_vm0 = vc.u32 %v532_v34, %v528_v51  ;;  %v550_v14 = vshll.u32 %v546_v30, 16  ;;  %v553_v53 = vsel %vm552_vm15, 1, %v1458_v2  ;;  %v554_v58 = vadd.s32 %v548_v48, %v544_v47 }
 0x149   : > { %v1007_v40 = vshrl.u32 %v989_v31, %v1005_v36  ;;  %v1010_v49 = vadd.s32 127, %v1009_v37  ;;  %vm828_vm1 = vcmp.lt.s32.totalorder %v2037_v7, 2  ;;  %v535_v0 = vsel %vm534_vm0, 1, %v1458_v2 }
 0x14a   : > { %v555_v57 = vadd.s32 %v553_v53, %v547_v12  ;;  %v506_v55 = vsel %vm504_vm8, %v1993_v46, 2102212464  ;;  %v527_v54 = vshrl.u32 %v523_v26, 16  ;;  %v537_v60 = vadd.s32 %v535_v0, %v533_v22 }
 0x14b   : > { %v1008_v43 = vor.u32 %v1007_v40, %v1006_v4  ;;  %v1011_v62 = vshll.u32 %v1010_v49, 23  ;;  %vm556_vm3 = vc.u32 %v554_v58, %v550_v14  ;;  %vm2062_vm4 = vcmp.le.f32.partialorder %v895_v21, 0.7853982 }
 0x14c   : > { %v505_v8 = vsel %vm501_vm7, %v485_v33, %v1989_v41  ;;  %v557_v11 = vsel %vm556_vm3, 1, %v1458_v2  ;;  %v381_v24 = vmul.f32 -0.001358992, %v1951_v45  ;;  %vm825_vm5 = vweird.f32 %v1673_v50 }
 0x14d   : > { %v1012_v3 = vor.u32 4788187, %v1011_v62  ;;  %v529_v46 = vshrl.u32 %v524_v9, 16  ;;  %v538_v1 = vadd.s32 %v537_v60, %v527_v54  ;;  %v549_v20 = vshrl.u32 %v545_v23, 16 }
 0x14e   : > { %v559_v15 = vadd.s32 %v557_v11, %v555_v57  ;;  %v1015_v21 = vcvt.s32.f32 %v1008_v43  ;;  %v507_v56 = vsel %vm503_vm9, %v1991_v16, %v506_v55  ;;  %v382_v26 = vadd.f32 0.041655596, %v381_v24 }
 0x14f   : > { %v1013_v31 = vand.u32 2147483647, %v1012_v3  ;;  %v379_v41 = vsel %vm1924_vm2, 0, %v2043_v18  ;;  %v2078_v2 = vadd.s32 %v538_v1, %v529_v46  ;;  %v551_v33 = vshrl.u32 %v546_v30, 16 }
 0x150   : > { %v560_v19 = vadd.s32 %v559_v15, %v549_v20  ;;  %v831_v9 = vsel %vm829_vm14, %v2021_v61, %v830_v32  ;;  %v2083_v38 = vadd.s32 %v554_v58, %v550_v14  ;;  %v383_v47 = vmul.f32 %v382_v26, %v1951_v45 }
 0x151   : > { %v1016_v23 = vmul.f32 %v1015_v21, %v1013_v31  ;;  %vm832_vm6 = vcmp.eq.s32.totalorder %v2037_v7, 2  ;;  %v393_v16 = vadd.f32 1.0, %v392_v59  ;;  %v508_v27 = vsel %vm502_vm11, %v505_v8, %v507_v56 }
 0x152   : > { %v561_v18 = vadd.s32 %v560_v19, %v551_v33  ;;  %v834_v39 = vsel %vm832_vm6, %v833_v17, %v2027_v63  ;;  %vm564_vm2 = vc.u32 %v2078_v2, %v2083_v38  ;;  %v384_v32 = vadd.f32 -0.4999988, %v383_v47 }
 0x153   : > { %v1017_v28 = vxor.u32 2147483648, %v1016_v23  ;;  %v835_v30 = vsel %vm828_vm1, %v831_v9, %v834_v39  ;;  %v396_v48 = vadd.s32 3, %v379_v41  ;;  %vm897_vm7 = vcmp.lt.s32.totalorder %v1811_v35, 0 }
 0x154   : > { %v565_v59 = vadd.s32 1, %v561_v18  ;;  %v1019_v36 = vsub.s32 4, %v1987_v10  ;;  %v562_v61 = vmul.u32 %v2000_v44, %v508_v27  ;;  %v385_v63 = vmul.f32 %v384_v32, %v1951_v45 }
 0x155   : > { %v1018_v29 = vsel %vm897_vm7, %v1017_v28, %v1016_v23  ;;  %v394_v17 = vmul.f32 %v393_v16, %v1938_v13  ;;  %v407_v12 = vlaneseq  ;;  %v836_v4 = vsel %vm825_vm5, nan, %v835_v30 }
 0x156   : > { %v1021_v7 = vsel %vm2062_vm4, %v1811_v35, %v1018_v29  ;;  %v566_v37 = vsel %vm564_vm2, %v565_v59, %v561_v18  ;;  %v386_v34 = vadd.f32 1.0, %v385_v63  ;;  %v397_v40 = vand.u32 3, %v396_v48 }
 0x157   : > { %v1023_v51 = vmul.f32 %v1021_v7, %v1021_v7  ;;  %v567_v25 = vadd.s32 %v566_v37, %v562_v61  ;;  %vm2109_vm8 = vcmp.lt.s32.totalorder %v407_v12, 128  ;;  %v1020_v13 = vsel %vm897_vm7, %v1019_v36, %v1987_v10 }
 0x158   : > { %v400_v14 = vxor.u32 2147483648, %v394_v17  ;;  %837 = vst.msk [vmem:[%s2116_s19 + $0x2] sm:$0x1] %vm2109_vm8, %v836_v4  ;;  %v403_v43 = vxor.u32 2147483648, %v386_v34  ;;  %v1022_v62 = vsel %vm2062_vm4, 0, %v1020_v13  ;;  %vm399_vm9 = vcmp.eq.s32.totalorder %v397_v40, 0 }
 0x159   : > { %v1024_v45 = vmul.f32 -0.001358992, %v1023_v51  ;;  %v1031_v44 = vmul.f32 -0.00019511016, %v1023_v51  ;;  %v568_v22 = vadd.s32 536870912, %v567_v25  ;;  %vm398_vm10 = vcmp.lt.s32.totalorder %v397_v40, 2 }
 0x15a   : > { %v401_v55 = vsel %vm399_vm9, %v386_v34, %v400_v14  ;;  %vm402_vm11 = vcmp.eq.s32.totalorder %v397_v40, 2  ;;  %vm395_vm12 = vweird.f32 %v1685_v5  ;;  %v1039_v11 = vadd.s32 3, %v1022_v62 }
 0x15b   : > { %v1025_v50 = vadd.f32 0.041655596, %v1024_v45  ;;  %v1032_v53 = vadd.f32 0.008332121, %v1031_v44  ;;  %v2121_v58 = vshrl.u32 %v568_v22, 30  ;;  %v404_v8 = vsel %vm402_vm11, %v403_v43, %v394_v17 }
 0x15c   : > { %v405_v24 = vsel %vm398_vm10, %v401_v55, %v404_v8  ;;  %v1040_v56 = vand.u32 3, %v1039_v11  ;;  %vm1038_vm14 = vweird.f32 %v1811_v35  ;;  %v563_v27 = vadd.s32 %v2083_v38, %v2078_v2 }
 0x15d   : > { %v1026_v0 = vmul.f32 %v1025_v50, %v1023_v51  ;;  %v1033_v10 = vmul.f32 %v1032_v53, %v1023_v51  ;;  %v570_v57 = vshll.u32 %v2121_v58, 30  ;;  %v406_v20 = vsel %vm395_vm12, nan, %v405_v24 }
 0x15e   : > { %411 = vst.msk [vmem:[%s2116_s19] sm:$0x1] %vm2109_vm8, %v406_v20  ;;  %vm1042_vm15 = vcmp.eq.s32.totalorder %v1040_v56, 0  ;;  %vm1045_vm0 = vcmp.eq.s32.totalorder %v1040_v56, 2  ;;  %vm1041_vm3 = vcmp.lt.s32.totalorder %v1040_v56, 2  ;;  %vm471_vm4 = vcmp.lt.s32.totalorder %v1915_v52, 0 }
 0x15f   : > { %v1027_v54 = vadd.f32 -0.4999988, %v1026_v0  ;;  %v1034_v60 = vadd.f32 -0.16666654, %v1033_v10  ;;  %v571_v3 = vsub.s32 %v567_v25, %v570_v57  ;;  %vm470_vm5 = vcmp.le.f32.partialorder %v469_v42, 0.7853982 }
 0x160   : > { %v593_v38 = vsub.s32 4, %v2121_v58  ;;  %vm612_vm9 = vweird.f32 %v1915_v52 }
 0x161   : > { %v1028_v46 = vmul.f32 %v1027_v54, %v1023_v51  ;;  %v1035_v6 = vmul.f32 %v1034_v60, %v1023_v51  ;;  %vm572_vm13 = vcmp.lt.s32.totalorder %v571_v3, 0  ;;  %v573_v1 = vsub.s32 0, %v571_v3 }
 0x162   : > { %v594_v51 = vsel %vm471_vm4, %v593_v38, %v2121_v58 }
 0x163   : > { %v1029_v15 = vadd.f32 1.0, %v1028_v46  ;;  %v1036_v31 = vadd.f32 1.0, %v1035_v6  ;;  %v574_v21 = vsel %vm572_vm13, %v573_v1, %v571_v3  ;;  %v596_v40 = vsel %vm470_vm5, 0, %v594_v51 }
 0x164   : > { %v575_v26 = vclz %v574_v21  ;;  %v613_v42 = vadd.s32 3, %v596_v40 }
 0x165   : > { %v1037_v41 = vmul.f32 %v1036_v31, %v1021_v7  ;;  %v1046_v33 = vxor.u32 2147483648, %v1029_v15 }
 0x166   : > { %v1168_v19 = vadd.s32 4294967294, %v575_v26  ;;  %v614_v62 = vand.u32 3, %v613_v42 }
 0x167   : > { %v1043_v9 = vxor.u32 2147483648, %v1037_v41  ;;  %v1047_v23 = vsel %vm1045_vm0, %v1046_v33, %v1037_v41 }
 0x168   : > { %vm1169_vm1 = vcmp.lt.s32.totalorder %v1168_v19, 0  ;;  %vm616_vm6 = vcmp.eq.s32.totalorder %v614_v62, 0  ;;  %vm619_vm2 = vcmp.eq.s32.totalorder %v614_v62, 2  ;;  %vm615_vm7 = vcmp.lt.s32.totalorder %v614_v62, 2 }
 0x169   : > { %v1044_v5 = vsel %vm1042_vm15, %v1029_v15, %v1043_v9  ;;  %v578_v47 = vsel %vm1169_vm1, 0, %v1168_v19 }
 0x16a   : > { %v1048_v16 = vsel %vm1041_vm3, %v1044_v5, %v1047_v23  ;;  %v579_v18 = vsub.s32 32, %v578_v47  ;;  %v583_v39 = vsub.s32 4294967266, %v578_v47  ;;  %v580_v32 = vshll.u32 %v571_v3, %v578_v47 }
 0x16b   : > { %v1049_v28 = vsel %vm1038_vm14, nan, %v1048_v16 }
 0x16c   : > { %v581_v30 = vshrl.u32 %v563_v27, %v579_v18  ;;  %v584_v48 = vadd.s32 127, %v583_v39  ;;  %1050 = vst.msk [vmem:[%s2116_s19 + $0x3] sm:$0x1] %vm2109_vm8, %v1049_v28 }
 0x16e   : > { %v582_v35 = vor.u32 %v581_v30, %v580_v32  ;;  %v585_v59 = vshll.u32 %v584_v48, 23 }
 0x170   : > { %v586_v29 = vor.u32 4788187, %v585_v59  ;;  %v589_v61 = vcvt.s32.f32 %v582_v35 }
 0x172   : > { %v587_v36 = vand.u32 2147483647, %v586_v29 }
 0x174   : > { %v590_v63 = vmul.f32 %v589_v61, %v587_v36 }
 0x176   : > { %v591_v17 = vxor.u32 2147483648, %v590_v63 }
 0x178   : > { %v592_v2 = vsel %vm471_vm4, %v591_v17, %v590_v63 }
 0x179   : > { %v595_v7 = vsel %vm470_vm5, %v1915_v52, %v592_v2 }
 0x17a   : > { %v597_v37 = vmul.f32 %v595_v7, %v595_v7 }
 0x17c   : > { %v598_v12 = vmul.f32 -0.001358992, %v597_v37  ;;  %v605_v4 = vmul.f32 -0.00019511016, %v597_v37 }
 0x17e   : > { %v599_v25 = vadd.f32 0.041655596, %v598_v12  ;;  %v606_v34 = vadd.f32 0.008332121, %v605_v4 }
 0x180   : > { %v600_v13 = vmul.f32 %v599_v25, %v597_v37  ;;  %v607_v45 = vmul.f32 %v606_v34, %v597_v37 }
 0x182   : > { %v601_v44 = vadd.f32 -0.4999988, %v600_v13  ;;  %v608_v22 = vadd.f32 -0.16666654, %v607_v45 }
 0x184   : > { %v602_v14 = vmul.f32 %v601_v44, %v597_v37  ;;  %v609_v50 = vmul.f32 %v608_v22, %v597_v37 }
 0x186   : > { %v603_v53 = vadd.f32 1.0, %v602_v14  ;;  %v610_v43 = vadd.f32 1.0, %v609_v50 }
 0x188   : > { %v611_v58 = vmul.f32 %v610_v43, %v595_v7  ;;  %v620_v0 = vxor.u32 2147483648, %v603_v53 }
 0x18a   : > { %v617_v10 = vxor.u32 2147483648, %v611_v58  ;;  %v621_v55 = vsel %vm619_vm2, %v620_v0, %v611_v58 }
 0x18c   : > { %v618_v57 = vsel %vm616_vm6, %v603_v53, %v617_v10 }
 0x18d   : > { %v622_v54 = vsel %vm615_vm7, %v618_v57, %v621_v55 }
 0x18e   : > { %v623_v60 = vsel %vm612_vm9, nan, %v622_v54 }
 0x18f   : > { %624 = vst.msk [vmem:[%s2116_s19 + $0x1] sm:$0x1] %vm2109_vm8, %v623_v60 }
 0x190   : > { %1394 = shalt.err (!%p1391_p0)
}
 0x191   : > { %1186 = dma.vmem_to_hbm [thread:$0]  (%p1580_p5), %s1067_s3, 64, %s1069_s4, %s1052_s12  }
 0x192 PF: > { %s1080_s22 = sand.u32 1, %s1433_s9   ;;  %p1197_p3 = pnand %p1160_p9, %p1550_p6 }
 0x193   : > { %s1081_s23 = scalar_lea.sflag [#allocation4], %s1080_s22 }
 0x194   : > { %p1198_p7 = pneg %p1197_p3 }
 0x196   : > { %1428 = dma.done.wait (%p1198_p7), %s1081_s23, 64  }
 0x197   : > { %1430 = vsyncadd (%p1198_p7), %s1081_s23, 4294967232  ;;  %s19_s14 = sadd.s32 1, %s1453_s14   ;;  %s2203_s9 = smov %s1437_s10 }
 0x198   : > { %p16_p10 = scmp.ge.s32.totalorder %s19_s14, 4   ;;  %s2204_s10 = smov %s1441_s11 }
 0x199   : > { %s2205_s11 = smov %s1589_s5  ;;  %s2206_s12 = smov %s1449_s13 }
 0x19a   : > { %s2207_s13 = smov %s2209_s27  ;;  %18 = sbr.rel (!%p16_p10) target bundleno = 7 (0x7), region = 77 }
 0x19f   :  { %1087 = vsyncpa [#allocation3], 1 }
 0x1a0   :  { %1089 = vsyncpa [#allocation3 + $0x1], 1 }
 0x1a1   :  { %1090 = vsyncpa [#allocation6], 1 }
 0x1a2   :  { %1091 = vsyncpa [#allocation4], 1 }
 0x1a3   :  { %1093 = vsyncpa [#allocation4 + $0x1], 1 }

</bundles_post_ra>
